<compile_context>
chip_gen: v5e
topology: v5e:2x2
jax: 0.10.0
libtpu: 0.0.40
codegen_flags: <defaults>
</compile_context>

<pallas_src>
import functools

import jax
import jax.numpy as jnp
from jax import lax
from jax.experimental import pallas as pl
from jax.experimental.pallas import tpu as pltpu

_LANE = 128      # TPU vreg lane width
_SUBLANE = 8     # TPU vreg sublane count (f32)


def _round_up(x, m):
    return (x + m - 1) // m * m


# ----------------------------------------------------------------------------
# Fused LSTM-stack kernel: one invocation per batch tile; layers + time inside.
# ----------------------------------------------------------------------------
def _encoder_lstm_kernel(x_ref, wih_ref, whh_ref, b_ref, h_ref, c_ref,
                         xp_ref, hseq_ref, *, hidden):
    """x_ref   : (T*B_blk, D_lanes) bf16  embedded inputs, time-major rows.
       wih_ref : (L, D_lanes, G_lanes) bf16  input-proj weights, gates packed.
       whh_ref : (L, H_lanes, G_lanes) bf16  recurrent weights, gates packed.
       b_ref   : (L, B_blk, G_lanes) f32     bias (b_ih+b_hh), sublane-broadcast.
       h_ref/c_ref : (L, B_blk, H_lanes) f32 final states (outputs).
       xp_ref  : (T*B_blk, G_lanes) f32      scratch: current layer's x @ W_ih + b.
       hseq_ref: (T*B_blk, D_lanes) bf16     scratch: layer l outputs -> layer l+1 input.
    """
    n_layers, b_blk, h_lanes = h_ref.shape
    tb, g_lanes = xp_ref.shape
    seq_len = tb // b_blk

    # g-gate lane mask for the packed [i|f|g|o] gate vector (hoisted: JAX does
    # not CSE broadcast_in_dim).
    lane = lax.broadcasted_iota(jnp.int32, (b_blk, g_lanes), 1)
    g_mask = (lane >= 2 * hidden) & (lane < 3 * hidden)

    # Scratch VMEM is uninitialized: zero once so padded lanes read by the next
    # layer's projection are exact zeros (they only hit zero weight rows).
    hseq_ref[...] = jnp.zeros_like(hseq_ref)

    zero_state = jnp.zeros((b_blk, h_lanes), jnp.float32)

    for l in range(n_layers):                         # static unroll over layers
        # ---- Input projection for ALL timesteps: one big MXU matmul ---------
        # (off the recurrent critical path; bias folded in here as well).
        xs = x_ref[...] if l == 0 else hseq_ref[...]          # (T*B, D) bf16
        proj = jnp.dot(xs, wih_ref[l], preferred_element_type=jnp.float32)
        xp_ref[...] = proj + jnp.concatenate([b_ref[l]] * seq_len, axis=0)

        whh_l = whh_ref[l]                                     # (H_lanes, G) bf16

        def step(t, carry, l=l):
            h, c = carry                                       # f32 (B_blk, H_lanes)
            row = t * b_blk
            # Only the recurrent matmul sits on the serial chain (K = H_lanes).
            gates = (jnp.dot(h.astype(jnp.bfloat16), whh_l,
                             preferred_element_type=jnp.float32)
                     + xp_ref[pl.ds(row, b_blk), :])
            # One sigmoid + one tanh over the packed gate vreg; pick tanh lanes
            # for the g gate with the iota mask.
            sig = jax.nn.sigmoid(gates)
            tnh = jnp.tanh(gates)
            ifgo = jnp.where(g_mask, tnh, sig)
            # Align each gate block to lanes [0, hidden) with XLU rotations.
            i_g = ifgo[:, :h_lanes]
            f_g = pltpu.roll(ifgo, g_lanes - hidden, 1)[:, :h_lanes]
            g_g = pltpu.roll(ifgo, g_lanes - 2 * hidden, 1)[:, :h_lanes]
            o_g = pltpu.roll(ifgo, g_lanes - 3 * hidden, 1)[:, :h_lanes]
            # Lanes >= hidden carry bounded junk from the rotations; they only
            # ever multiply zero weight rows or get sliced off, so lanes
            # [0, hidden) are exact.
            c_new = f_g * c + i_g * g_g
            h_new = o_g * jnp.tanh(c_new)
            if l + 1 < n_layers:   # static: feed the next layer's projection
                hseq_ref[pl.ds(row, b_blk), 0:h_lanes] = h_new.astype(jnp.bfloat16)
            return h_new, c_new

        h_fin, c_fin = lax.fori_loop(0, seq_len, step, (zero_state, zero_state),
                                     unroll=(seq_len <= 16))
        h_ref[l] = h_fin
        c_ref[l] = c_fin


def _encoder_pallas(x_tiles, w_ih, w_hh, b, *, hidden):
    """x_tiles: (nb, T*B_blk, D_lanes) bf16;  w_ih: (L, D_lanes, G) bf16;
       w_hh: (L, H_lanes, G) bf16;  b: (L, B_blk, G) f32."""
    nb, tb, d_lanes = x_tiles.shape
    n_layers, h_lanes, g_lanes = w_hh.shape
    b_blk = b.shape[1]

    kernel = functools.partial(_encoder_lstm_kernel, hidden=hidden)
    out_shape = (
        jax.ShapeDtypeStruct((n_layers, nb * b_blk, h_lanes), jnp.float32),
        jax.ShapeDtypeStruct((n_layers, nb * b_blk, h_lanes), jnp.float32),
    )
    return pl.pallas_call(
        kernel,
        out_shape=out_shape,
        grid_spec=pltpu.PrefetchScalarGridSpec(
            num_scalar_prefetch=0,
            grid=(nb,),                      # independent batch tiles
            in_specs=[
                pl.BlockSpec((None, tb, d_lanes), lambda i: (i, 0, 0)),
                pl.BlockSpec((n_layers, d_lanes, g_lanes), lambda i: (0, 0, 0)),
                pl.BlockSpec((n_layers, h_lanes, g_lanes), lambda i: (0, 0, 0)),
                pl.BlockSpec((n_layers, b_blk, g_lanes), lambda i: (0, 0, 0)),
            ],
            out_specs=[
                pl.BlockSpec((n_layers, b_blk, h_lanes), lambda i: (0, i, 0)),
                pl.BlockSpec((n_layers, b_blk, h_lanes), lambda i: (0, i, 0)),
            ],
            scratch_shapes=[
                pltpu.VMEM((tb, g_lanes), jnp.float32),    # per-layer x @ W_ih + b
                pltpu.VMEM((tb, d_lanes), jnp.bfloat16),   # inter-layer h sequence
            ],
        ),
        compiler_params=pltpu.CompilerParams(
            dimension_semantics=("parallel",)),
    )(x_tiles, w_ih, w_hh, b)


# ----------------------------------------------------------------------------
# Parameter construction (PyTorch-shaped) and packing into the fused layout.
# ----------------------------------------------------------------------------
def init_encoder_params(key, input_dim, embedding_dim, hidden_dim, n_layers):
    keys = jax.random.split(key, 1 + 4 * n_layers)
    params = {"embedding": jax.random.normal(
        keys[0], (input_dim, embedding_dim), jnp.float32) * 0.1, "lstm": []}
    for layer in range(n_layers):
        in_dim = embedding_dim if layer == 0 else hidden_dim
        k_wih, k_whh, k_bih, k_bhh = keys[1 + 4 * layer: 5 + 4 * layer]
        scale = 1.0 / jnp.sqrt(hidden_dim)
        w_ih_t = jax.random.uniform(k_wih, (in_dim, 4 * hidden_dim),
                                    jnp.float32, -1.0, 1.0) * scale
        w_hh_t = jax.random.uniform(k_whh, (hidden_dim, 4 * hidden_dim),
                                    jnp.float32, -1.0, 1.0) * scale
        b_ih = jax.random.uniform(k_bih, (4 * hidden_dim,),
                                  jnp.float32, -1.0, 1.0) * scale
        b_hh = jax.random.uniform(k_bhh, (4 * hidden_dim,),
                                  jnp.float32, -1.0, 1.0) * scale
        params["lstm"].append(
            dict(w_ih_t=w_ih_t, w_hh_t=w_hh_t, bias=b_ih + b_hh))
    return params


def pack_encoder_params(params):
    """Pack per-layer weights into gate-packed, lane/sublane-padded operands."""
    emb = params["embedding"]
    E = emb.shape[1]
    layers = params["lstm"]
    n_layers = len(layers)
    H = layers[0]["w_hh_t"].shape[0]
    H_lanes = _round_up(H, _LANE)
    D_lanes = max(_round_up(E, _LANE), H_lanes)     # width of layer inputs
    G_lanes = _round_up(4 * H, _LANE)               # packed [i|f|g|o] gate width

    w_ih = jnp.zeros((n_layers, D_lanes, G_lanes), jnp.float32)
    w_hh = jnp.zeros((n_layers, H_lanes, G_lanes), jnp.float32)
    b = jnp.zeros((n_layers, _SUBLANE, G_lanes), jnp.float32)
    for l, lp in enumerate(layers):
        in_dim = lp["w_ih_t"].shape[0]
        w_ih = w_ih.at[l, :in_dim, :4 * H].set(lp["w_ih_t"])
        w_hh = w_hh.at[l, :H, :4 * H].set(lp["w_hh_t"])
        b = b.at[l, :, :4 * H].set(
            jnp.broadcast_to(lp["bias"], (_SUBLANE, 4 * H)))
    return {"embedding": emb,
            "w_ih": w_ih.astype(jnp.bfloat16),      # bf16 MXU inputs
            "w_hh": w_hh.astype(jnp.bfloat16),
            "b": b}                                  # bias stays f32


@functools.partial(jax.jit, static_argnames=("embedding_dim", "hidden_dim"))
def encoder_forward(packed, tokens, *, embedding_dim, hidden_dim):
    """tokens: (T, B) int32 -> (state_h, state_c), each (n_layers, B, H)."""
    T, B = tokens.shape
    w_ih, w_hh, b, emb = packed["w_ih"], packed["w_hh"], packed["b"], packed["embedding"]
    n_layers, d_lanes, g_lanes = w_ih.shape
    b_blk = b.shape[1]
    B_pad = _round_up(B, b_blk)
    nb = B_pad // b_blk

    # Embedding lookup + eval-mode dropout (identity).
    # TODO(synk): in-kernel embedding gather (scalar-prefetch tokens) skipped;
    #             the table is a few KB and XLA fuses the gather + pad.
    x = jnp.take(emb, tokens, axis=0)                          # (T, B, E) f32
    x_pad = jnp.zeros((T, B_pad, d_lanes), jnp.float32)
    x_pad = x_pad.at[:, :B, :embedding_dim].set(x)
    # (T, B_pad, D) -> (nb, T*B_blk, D): per batch tile, time-major rows.
    x_tiles = (x_pad.reshape(T, nb, b_blk, d_lanes)
               .transpose(1, 0, 2, 3)
               .reshape(nb, T * b_blk, d_lanes)
               .astype(jnp.bfloat16))

    h_all, c_all = _encoder_pallas(x_tiles, w_ih, w_hh, b, hidden=hidden_dim)
    return h_all[:, :B, :hidden_dim], c_all[:, :B, :hidden_dim]


# ----------------------------------------------------------------------------
# Pure-JAX reference (PyTorch-equivalent eval-mode forward) for verification.
# ----------------------------------------------------------------------------
def encoder_reference(params, tokens):
    hp = jax.lax.Precision.HIGHEST
    inp = jnp.take(params["embedding"], tokens, axis=0)          # (T, B, E)
    hs, cs = [], []
    for lp in params["lstm"]:
        H = lp["w_hh_t"].shape[0]
        T, B, _ = inp.shape
        h = jnp.zeros((B, H), jnp.float32)
        c = jnp.zeros((B, H), jnp.float32)
        ys = []
        for t in range(T):
            gates = (jnp.dot(inp[t], lp["w_ih_t"], precision=hp)
                     + jnp.dot(h, lp["w_hh_t"], precision=hp)
                     + lp["bias"][None, :])
            i = jax.nn.sigmoid(gates[:, 0 * H:1 * H])
            f = jax.nn.sigmoid(gates[:, 1 * H:2 * H])
            g = jnp.tanh(gates[:, 2 * H:3 * H])
            o = jax.nn.sigmoid(gates[:, 3 * H:4 * H])
            c = f * c + i * g
            h = o * jnp.tanh(c)
            ys.append(h)
        inp = jnp.stack(ys, 0)
        hs.append(h)
        cs.append(c)
    return jnp.stack(hs, 0), jnp.stack(cs, 0)


if __name__ == "__main__":
    input_dim = 50         # vocab size
    embedding_dim = 32
    hidden_dim = 32
    n_layers = 2
    seq_len = 8
    batch = 4

    key = jax.random.PRNGKey(0)
    k_params, k_tokens = jax.random.split(key)
    params = init_encoder_params(k_params, input_dim, embedding_dim,
                                 hidden_dim, n_layers)
    packed = pack_encoder_params(params)
    tokens = jax.random.randint(k_tokens, (seq_len, batch), 0, input_dim,
                                dtype=jnp.int32)

    state_h, state_c = encoder_forward(packed, tokens,
                                       embedding_dim=embedding_dim,
                                       hidden_dim=hidden_dim)
    jax.block_until_ready((state_h, state_c))

    assert state_h.shape == (n_layers, batch, hidden_dim)
    assert state_c.shape == (n_layers, batch, hidden_dim)

    ref_h, ref_c = encoder_reference(params, tokens)
    # bf16 MXU inputs (weights + activations at the dots) -> slightly looser
    # tolerance than a pure-f32 comparison; elementwise/accumulation stay f32.
    assert jnp.allclose(state_h, ref_h, atol=1e-2, rtol=1e-2), (
        float(jnp.max(jnp.abs(state_h - ref_h))))
    assert jnp.allclose(state_c, ref_c, atol=1e-2, rtol=1e-2), (
        float(jnp.max(jnp.abs(state_c - ref_c))))

    print("KERNEL_OK")
</pallas_src>

<mosaic_0001>
module attributes {stable_mosaic.version = 11 : i64} {
  func.func @_encoder_lstm_kernel(%arg0: i32, %arg1: memref<1x64x128xbf16, #tpu.memory_space<vmem>>, %arg2: memref<2x128x128xbf16, #tpu.memory_space<vmem>>, %arg3: memref<2x128x128xbf16, #tpu.memory_space<vmem>>, %arg4: memref<2x8x128xf32, #tpu.memory_space<vmem>>, %arg5: memref<2x8x128xf32, #tpu.memory_space<vmem>>, %arg6: memref<2x8x128xf32, #tpu.memory_space<vmem>>, %arg7: memref<64x128xf32, #tpu.memory_space<vmem>>, %arg8: memref<64x128xbf16, #tpu.memory_space<vmem>>) attributes {dimension_semantics = [#tpu.dimension_semantics<parallel>], iteration_bounds = array<i64: 1>, scalar_prefetch = 0 : i64, scratch_operands = 2 : i64, tpu.core_type = #tpu.core_type<tc>, window_params = [{transform_indices = @transform_0, window_bounds = array<i64: 1, 64, 128>}, {pipeline_mode = #tpu.pipeline_mode<synchronous>, transform_indices = @transform_1, window_bounds = array<i64: 2, 128, 128>}, {pipeline_mode = #tpu.pipeline_mode<synchronous>, transform_indices = @transform_2, window_bounds = array<i64: 2, 128, 128>}, {pipeline_mode = #tpu.pipeline_mode<synchronous>, transform_indices = @transform_3, window_bounds = array<i64: 2, 8, 128>}, {transform_indices = @transform_4, window_bounds = array<i64: 2, 8, 128>}, {transform_indices = @transform_5, window_bounds = array<i64: 2, 8, 128>}]} {
    %0 = tpu.iota {dimensions = array<i32: 1>} : vector<8x128xi32>
    %c64_i32 = arith.constant 64 : i32
    %1 = vector.broadcast %c64_i32 : i32 to vector<8x128xi32>
    %2 = arith.cmpi sge, %0, %1 : vector<8x128xi32>
    %c96_i32 = arith.constant 96 : i32
    %3 = vector.broadcast %c96_i32 : i32 to vector<8x128xi32>
    %4 = arith.cmpi slt, %0, %3 : vector<8x128xi32>
    %5 = arith.andi %2, %4 : vector<8x128xi1>
    %cst = arith.constant 0.000000e+00 : bf16
    %6 = vector.broadcast %cst : bf16 to vector<64x128xbf16>
    %c0 = arith.constant 0 : index
    %c0_0 = arith.constant 0 : index
    %7 = vector.load %arg8[%c0, %c0_0] : memref<64x128xbf16, #tpu.memory_space<vmem>>, vector<64x128xbf16>
    tpu.vector_store %arg8[%c0, %c0_0], %6 {strides = array<i32>} : memref<64x128xbf16, #tpu.memory_space<vmem>>, vector<64x128xbf16>,
    %cst_1 = arith.constant 0.000000e+00 : f32
    %8 = vector.broadcast %cst_1 : f32 to vector<8x128xf32>
    %c0_2 = arith.constant 0 : index
    %c0_3 = arith.constant 0 : index
    %c0_4 = arith.constant 0 : index
    %9 = vector.load %arg1[%c0_2, %c0_3, %c0_4] : memref<1x64x128xbf16, #tpu.memory_space<vmem>>, vector<1x64x128xbf16>
    %10 = vector.shape_cast %9 : vector<1x64x128xbf16> to vector<64x128xbf16>
    %c0_5 = arith.constant 0 : index
    %c0_6 = arith.constant 0 : index
    %c0_7 = arith.constant 0 : index
    %11 = vector.load %arg2[%c0_5, %c0_6, %c0_7] : memref<2x128x128xbf16, #tpu.memory_space<vmem>>, vector<1x128x128xbf16>
    %12 = vector.shape_cast %11 : vector<1x128x128xbf16> to vector<128x128xbf16>
    %cst_8 = arith.constant dense<0.000000e+00> : vector<64x128xf32>
    %13 = tpu.matmul %10, %12, %cst_8 {dimension_numbers = #tpu.dot_dimension_numbers<[1], [0], [0], [1], [0, 0, 1, 1], [], []>} : vector<64x128xbf16>, vector<128x128xbf16>, vector<64x128xf32> -> vector<64x128xf32>
    %c0_9 = arith.constant 0 : index
    %c0_10 = arith.constant 0 : index
    %c0_11 = arith.constant 0 : index
    %14 = vector.load %arg4[%c0_9, %c0_10, %c0_11] : memref<2x8x128xf32, #tpu.memory_space<vmem>>, vector<1x8x128xf32>
    %15 = vector.shape_cast %14 : vector<1x8x128xf32> to vector<8x128xf32>
    %16 = tpu.concatenate %15, %15, %15, %15, %15, %15, %15, %15 in 0 : vector<8x128xf32>, vector<8x128xf32>, vector<8x128xf32>, vector<8x128xf32>, vector<8x128xf32>, vector<8x128xf32>, vector<8x128xf32>, vector<8x128xf32> -> vector<64x128xf32>
    %17 = arith.addf %13, %16 : vector<64x128xf32>
    %c0_12 = arith.constant 0 : index
    %c0_13 = arith.constant 0 : index
    %18 = vector.load %arg7[%c0_12, %c0_13] : memref<64x128xf32, #tpu.memory_space<vmem>>, vector<64x128xf32>
    tpu.vector_store %arg7[%c0_12, %c0_13], %17 {strides = array<i32>} : memref<64x128xf32, #tpu.memory_space<vmem>>, vector<64x128xf32>,
    %c0_14 = arith.constant 0 : index
    %c0_15 = arith.constant 0 : index
    %c0_16 = arith.constant 0 : index
    %19 = vector.load %arg3[%c0_14, %c0_15, %c0_16] : memref<2x128x128xbf16, #tpu.memory_space<vmem>>, vector<1x128x128xbf16>
    %20 = vector.shape_cast %19 : vector<1x128x128xbf16> to vector<128x128xbf16>
    %c0_i32 = arith.constant 0 : i32
    %c8_i32 = arith.constant 8 : i32
    %21 = arith.muli %c0_i32, %c8_i32 : i32
    %22 = arith.truncf %8 : vector<8x128xf32> to vector<8x128xbf16>
    %cst_17 = arith.constant dense<0.000000e+00> : vector<8x128xf32>
    %23 = tpu.matmul %22, %20, %cst_17 {dimension_numbers = #tpu.dot_dimension_numbers<[1], [0], [0], [1], [0, 0, 1, 1], [], []>} : vector<8x128xbf16>, vector<128x128xbf16>, vector<8x128xf32> -> vector<8x128xf32>
    %24 = arith.index_cast %21 : i32 to index
    %c0_18 = arith.constant 0 : index
    %25 = vector.load %arg7[%24, %c0_18] : memref<64x128xf32, #tpu.memory_space<vmem>>, vector<8x128xf32>
    %26 = arith.addf %23, %25 : vector<8x128xf32>
    %27 = arith.negf %26 : vector<8x128xf32>
    %28 = math.exp %27 : vector<8x128xf32>
    %cst_19 = arith.constant 1.000000e+00 : f32
    %29 = vector.broadcast %cst_19 : f32 to vector<8x128xf32>
    %30 = arith.addf %29, %28 : vector<8x128xf32>
    %31 = arith.divf %29, %30 : vector<8x128xf32>
    %32 = math.tanh %26 : vector<8x128xf32>
    %33 = arith.select %5, %32, %31 : vector<8x128xi1>, vector<8x128xf32>
    %c96_i32_20 = arith.constant 96 : i32
    %34 = tpu.dynamic_rotate %33 by %c96_i32_20 dim 1 : vector<8x128xf32>, i32 -> vector<8x128xf32>
    %c64_i32_21 = arith.constant 64 : i32
    %35 = tpu.dynamic_rotate %33 by %c64_i32_21 dim 1 : vector<8x128xf32>, i32 -> vector<8x128xf32>
    %c32_i32 = arith.constant 32 : i32
    %36 = tpu.dynamic_rotate %33 by %c32_i32 dim 1 : vector<8x128xf32>, i32 -> vector<8x128xf32>
    %37 = arith.mulf %34, %8 : vector<8x128xf32>
    %38 = arith.mulf %33, %35 : vector<8x128xf32>
    %39 = arith.addf %37, %38 : vector<8x128xf32>
    %40 = math.tanh %39 : vector<8x128xf32>
    %41 = arith.mulf %36, %40 : vector<8x128xf32>
    %42 = arith.truncf %41 : vector<8x128xf32> to vector<8x128xbf16>
    %43 = arith.index_cast %21 : i32 to index
    %c0_22 = arith.constant 0 : index
    %44 = vector.load %arg8[%43, %c0_22] : memref<64x128xbf16, #tpu.memory_space<vmem>>, vector<8x128xbf16>
    tpu.vector_store %arg8[%43, %c0_22], %42 {strides = array<i32>} : memref<64x128xbf16, #tpu.memory_space<vmem>>, vector<8x128xbf16>,
    %c1_i32 = arith.constant 1 : i32
    %c8_i32_23 = arith.constant 8 : i32
    %45 = arith.muli %c1_i32, %c8_i32_23 : i32
    %46 = arith.truncf %41 : vector<8x128xf32> to vector<8x128xbf16>
    %cst_24 = arith.constant dense<0.000000e+00> : vector<8x128xf32>
    %47 = tpu.matmul %46, %20, %cst_24 {dimension_numbers = #tpu.dot_dimension_numbers<[1], [0], [0], [1], [0, 0, 1, 1], [], []>} : vector<8x128xbf16>, vector<128x128xbf16>, vector<8x128xf32> -> vector<8x128xf32>
    %48 = arith.index_cast %45 : i32 to index
    %c0_25 = arith.constant 0 : index
    %49 = vector.load %arg7[%48, %c0_25] : memref<64x128xf32, #tpu.memory_space<vmem>>, vector<8x128xf32>
    %50 = arith.addf %47, %49 : vector<8x128xf32>
    %51 = arith.negf %50 : vector<8x128xf32>
    %52 = math.exp %51 : vector<8x128xf32>
    %cst_26 = arith.constant 1.000000e+00 : f32
    %53 = vector.broadcast %cst_26 : f32 to vector<8x128xf32>
    %54 = arith.addf %53, %52 : vector<8x128xf32>
    %55 = arith.divf %53, %54 : vector<8x128xf32>
    %56 = math.tanh %50 : vector<8x128xf32>
    %57 = arith.select %5, %56, %55 : vector<8x128xi1>, vector<8x128xf32>
    %c96_i32_27 = arith.constant 96 : i32
    %58 = tpu.dynamic_rotate %57 by %c96_i32_27 dim 1 : vector<8x128xf32>, i32 -> vector<8x128xf32>
    %c64_i32_28 = arith.constant 64 : i32
    %59 = tpu.dynamic_rotate %57 by %c64_i32_28 dim 1 : vector<8x128xf32>, i32 -> vector<8x128xf32>
    %c32_i32_29 = arith.constant 32 : i32
    %60 = tpu.dynamic_rotate %57 by %c32_i32_29 dim 1 : vector<8x128xf32>, i32 -> vector<8x128xf32>
    %61 = arith.mulf %58, %39 : vector<8x128xf32>
    %62 = arith.mulf %57, %59 : vector<8x128xf32>
    %63 = arith.addf %61, %62 : vector<8x128xf32>
    %64 = math.tanh %63 : vector<8x128xf32>
    %65 = arith.mulf %60, %64 : vector<8x128xf32>
    %66 = arith.truncf %65 : vector<8x128xf32> to vector<8x128xbf16>
    %67 = arith.index_cast %45 : i32 to index
    %c0_30 = arith.constant 0 : index
    %68 = vector.load %arg8[%67, %c0_30] : memref<64x128xbf16, #tpu.memory_space<vmem>>, vector<8x128xbf16>
    tpu.vector_store %arg8[%67, %c0_30], %66 {strides = array<i32>} : memref<64x128xbf16, #tpu.memory_space<vmem>>, vector<8x128xbf16>,
    %c2_i32 = arith.constant 2 : i32
    %c8_i32_31 = arith.constant 8 : i32
    %69 = arith.muli %c2_i32, %c8_i32_31 : i32
    %70 = arith.truncf %65 : vector<8x128xf32> to vector<8x128xbf16>
    %cst_32 = arith.constant dense<0.000000e+00> : vector<8x128xf32>
    %71 = tpu.matmul %70, %20, %cst_32 {dimension_numbers = #tpu.dot_dimension_numbers<[1], [0], [0], [1], [0, 0, 1, 1], [], []>} : vector<8x128xbf16>, vector<128x128xbf16>, vector<8x128xf32> -> vector<8x128xf32>
    %72 = arith.index_cast %69 : i32 to index
    %c0_33 = arith.constant 0 : index
    %73 = vector.load %arg7[%72, %c0_33] : memref<64x128xf32, #tpu.memory_space<vmem>>, vector<8x128xf32>
    %74 = arith.addf %71, %73 : vector<8x128xf32>
    %75 = arith.negf %74 : vector<8x128xf32>
    %76 = math.exp %75 : vector<8x128xf32>
    %cst_34 = arith.constant 1.000000e+00 : f32
    %77 = vector.broadcast %cst_34 : f32 to vector<8x128xf32>
    %78 = arith.addf %77, %76 : vector<8x128xf32>
    %79 = arith.divf %77, %78 : vector<8x128xf32>
    %80 = math.tanh %74 : vector<8x128xf32>
    %81 = arith.select %5, %80, %79 : vector<8x128xi1>, vector<8x128xf32>
    %c96_i32_35 = arith.constant 96 : i32
    %82 = tpu.dynamic_rotate %81 by %c96_i32_35 dim 1 : vector<8x128xf32>, i32 -> vector<8x128xf32>
    %c64_i32_36 = arith.constant 64 : i32
    %83 = tpu.dynamic_rotate %81 by %c64_i32_36 dim 1 : vector<8x128xf32>, i32 -> vector<8x128xf32>
    %c32_i32_37 = arith.constant 32 : i32
    %84 = tpu.dynamic_rotate %81 by %c32_i32_37 dim 1 : vector<8x128xf32>, i32 -> vector<8x128xf32>
    %85 = arith.mulf %82, %63 : vector<8x128xf32>
    %86 = arith.mulf %81, %83 : vector<8x128xf32>
    %87 = arith.addf %85, %86 : vector<8x128xf32>
    %88 = math.tanh %87 : vector<8x128xf32>
    %89 = arith.mulf %84, %88 : vector<8x128xf32>
    %90 = arith.truncf %89 : vector<8x128xf32> to vector<8x128xbf16>
    %91 = arith.index_cast %69 : i32 to index
    %c0_38 = arith.constant 0 : index
    %92 = vector.load %arg8[%91, %c0_38] : memref<64x128xbf16, #tpu.memory_space<vmem>>, vector<8x128xbf16>
    tpu.vector_store %arg8[%91, %c0_38], %90 {strides = array<i32>} : memref<64x128xbf16, #tpu.memory_space<vmem>>, vector<8x128xbf16>,
    %c3_i32 = arith.constant 3 : i32
    %c8_i32_39 = arith.constant 8 : i32
    %93 = arith.muli %c3_i32, %c8_i32_39 : i32
    %94 = arith.truncf %89 : vector<8x128xf32> to vector<8x128xbf16>
    %cst_40 = arith.constant dense<0.000000e+00> : vector<8x128xf32>
    %95 = tpu.matmul %94, %20, %cst_40 {dimension_numbers = #tpu.dot_dimension_numbers<[1], [0], [0], [1], [0, 0, 1, 1], [], []>} : vector<8x128xbf16>, vector<128x128xbf16>, vector<8x128xf32> -> vector<8x128xf32>
    %96 = arith.index_cast %93 : i32 to index
    %c0_41 = arith.constant 0 : index
    %97 = vector.load %arg7[%96, %c0_41] : memref<64x128xf32, #tpu.memory_space<vmem>>, vector<8x128xf32>
    %98 = arith.addf %95, %97 : vector<8x128xf32>
    %99 = arith.negf %98 : vector<8x128xf32>
    %100 = math.exp %99 : vector<8x128xf32>
    %cst_42 = arith.constant 1.000000e+00 : f32
    %101 = vector.broadcast %cst_42 : f32 to vector<8x128xf32>
    %102 = arith.addf %101, %100 : vector<8x128xf32>
    %103 = arith.divf %101, %102 : vector<8x128xf32>
    %104 = math.tanh %98 : vector<8x128xf32>
    %105 = arith.select %5, %104, %103 : vector<8x128xi1>, vector<8x128xf32>
    %c96_i32_43 = arith.constant 96 : i32
    %106 = tpu.dynamic_rotate %105 by %c96_i32_43 dim 1 : vector<8x128xf32>, i32 -> vector<8x128xf32>
    %c64_i32_44 = arith.constant 64 : i32
    %107 = tpu.dynamic_rotate %105 by %c64_i32_44 dim 1 : vector<8x128xf32>, i32 -> vector<8x128xf32>
    %c32_i32_45 = arith.constant 32 : i32
    %108 = tpu.dynamic_rotate %105 by %c32_i32_45 dim 1 : vector<8x128xf32>, i32 -> vector<8x128xf32>
    %109 = arith.mulf %106, %87 : vector<8x128xf32>
    %110 = arith.mulf %105, %107 : vector<8x128xf32>
    %111 = arith.addf %109, %110 : vector<8x128xf32>
    %112 = math.tanh %111 : vector<8x128xf32>
    %113 = arith.mulf %108, %112 : vector<8x128xf32>
    %114 = arith.truncf %113 : vector<8x128xf32> to vector<8x128xbf16>
    %115 = arith.index_cast %93 : i32 to index
    %c0_46 = arith.constant 0 : index
    %116 = vector.load %arg8[%115, %c0_46] : memref<64x128xbf16, #tpu.memory_space<vmem>>, vector<8x128xbf16>
    tpu.vector_store %arg8[%115, %c0_46], %114 {strides = array<i32>} : memref<64x128xbf16, #tpu.memory_space<vmem>>, vector<8x128xbf16>,
    %c4_i32 = arith.constant 4 : i32
    %c8_i32_47 = arith.constant 8 : i32
    %117 = arith.muli %c4_i32, %c8_i32_47 : i32
    %118 = arith.truncf %113 : vector<8x128xf32> to vector<8x128xbf16>
    %cst_48 = arith.constant dense<0.000000e+00> : vector<8x128xf32>
    %119 = tpu.matmul %118, %20, %cst_48 {dimension_numbers = #tpu.dot_dimension_numbers<[1], [0], [0], [1], [0, 0, 1, 1], [], []>} : vector<8x128xbf16>, vector<128x128xbf16>, vector<8x128xf32> -> vector<8x128xf32>
    %120 = arith.index_cast %117 : i32 to index
    %c0_49 = arith.constant 0 : index
    %121 = vector.load %arg7[%120, %c0_49] : memref<64x128xf32, #tpu.memory_space<vmem>>, vector<8x128xf32>
    %122 = arith.addf %119, %121 : vector<8x128xf32>
    %123 = arith.negf %122 : vector<8x128xf32>
    %124 = math.exp %123 : vector<8x128xf32>
    %cst_50 = arith.constant 1.000000e+00 : f32
    %125 = vector.broadcast %cst_50 : f32 to vector<8x128xf32>
    %126 = arith.addf %125, %124 : vector<8x128xf32>
    %127 = arith.divf %125, %126 : vector<8x128xf32>
    %128 = math.tanh %122 : vector<8x128xf32>
    %129 = arith.select %5, %128, %127 : vector<8x128xi1>, vector<8x128xf32>
    %c96_i32_51 = arith.constant 96 : i32
    %130 = tpu.dynamic_rotate %129 by %c96_i32_51 dim 1 : vector<8x128xf32>, i32 -> vector<8x128xf32>
    %c64_i32_52 = arith.constant 64 : i32
    %131 = tpu.dynamic_rotate %129 by %c64_i32_52 dim 1 : vector<8x128xf32>, i32 -> vector<8x128xf32>
    %c32_i32_53 = arith.constant 32 : i32
    %132 = tpu.dynamic_rotate %129 by %c32_i32_53 dim 1 : vector<8x128xf32>, i32 -> vector<8x128xf32>
    %133 = arith.mulf %130, %111 : vector<8x128xf32>
    %134 = arith.mulf %129, %131 : vector<8x128xf32>
    %135 = arith.addf %133, %134 : vector<8x128xf32>
    %136 = math.tanh %135 : vector<8x128xf32>
    %137 = arith.mulf %132, %136 : vector<8x128xf32>
    %138 = arith.truncf %137 : vector<8x128xf32> to vector<8x128xbf16>
    %139 = arith.index_cast %117 : i32 to index
    %c0_54 = arith.constant 0 : index
    %140 = vector.load %arg8[%139, %c0_54] : memref<64x128xbf16, #tpu.memory_space<vmem>>, vector<8x128xbf16>
    tpu.vector_store %arg8[%139, %c0_54], %138 {strides = array<i32>} : memref<64x128xbf16, #tpu.memory_space<vmem>>, vector<8x128xbf16>,
    %c5_i32 = arith.constant 5 : i32
    %c8_i32_55 = arith.constant 8 : i32
    %141 = arith.muli %c5_i32, %c8_i32_55 : i32
    %142 = arith.truncf %137 : vector<8x128xf32> to vector<8x128xbf16>
    %cst_56 = arith.constant dense<0.000000e+00> : vector<8x128xf32>
    %143 = tpu.matmul %142, %20, %cst_56 {dimension_numbers = #tpu.dot_dimension_numbers<[1], [0], [0], [1], [0, 0, 1, 1], [], []>} : vector<8x128xbf16>, vector<128x128xbf16>, vector<8x128xf32> -> vector<8x128xf32>
    %144 = arith.index_cast %141 : i32 to index
    %c0_57 = arith.constant 0 : index
    %145 = vector.load %arg7[%144, %c0_57] : memref<64x128xf32, #tpu.memory_space<vmem>>, vector<8x128xf32>
    %146 = arith.addf %143, %145 : vector<8x128xf32>
    %147 = arith.negf %146 : vector<8x128xf32>
    %148 = math.exp %147 : vector<8x128xf32>
    %cst_58 = arith.constant 1.000000e+00 : f32
    %149 = vector.broadcast %cst_58 : f32 to vector<8x128xf32>
    %150 = arith.addf %149, %148 : vector<8x128xf32>
    %151 = arith.divf %149, %150 : vector<8x128xf32>
    %152 = math.tanh %146 : vector<8x128xf32>
    %153 = arith.select %5, %152, %151 : vector<8x128xi1>, vector<8x128xf32>
    %c96_i32_59 = arith.constant 96 : i32
    %154 = tpu.dynamic_rotate %153 by %c96_i32_59 dim 1 : vector<8x128xf32>, i32 -> vector<8x128xf32>
    %c64_i32_60 = arith.constant 64 : i32
    %155 = tpu.dynamic_rotate %153 by %c64_i32_60 dim 1 : vector<8x128xf32>, i32 -> vector<8x128xf32>
    %c32_i32_61 = arith.constant 32 : i32
    %156 = tpu.dynamic_rotate %153 by %c32_i32_61 dim 1 : vector<8x128xf32>, i32 -> vector<8x128xf32>
    %157 = arith.mulf %154, %135 : vector<8x128xf32>
    %158 = arith.mulf %153, %155 : vector<8x128xf32>
    %159 = arith.addf %157, %158 : vector<8x128xf32>
    %160 = math.tanh %159 : vector<8x128xf32>
    %161 = arith.mulf %156, %160 : vector<8x128xf32>
    %162 = arith.truncf %161 : vector<8x128xf32> to vector<8x128xbf16>
    %163 = arith.index_cast %141 : i32 to index
    %c0_62 = arith.constant 0 : index
    %164 = vector.load %arg8[%163, %c0_62] : memref<64x128xbf16, #tpu.memory_space<vmem>>, vector<8x128xbf16>
    tpu.vector_store %arg8[%163, %c0_62], %162 {strides = array<i32>} : memref<64x128xbf16, #tpu.memory_space<vmem>>, vector<8x128xbf16>,
    %c6_i32 = arith.constant 6 : i32
    %c8_i32_63 = arith.constant 8 : i32
    %165 = arith.muli %c6_i32, %c8_i32_63 : i32
    %166 = arith.truncf %161 : vector<8x128xf32> to vector<8x128xbf16>
    %cst_64 = arith.constant dense<0.000000e+00> : vector<8x128xf32>
    %167 = tpu.matmul %166, %20, %cst_64 {dimension_numbers = #tpu.dot_dimension_numbers<[1], [0], [0], [1], [0, 0, 1, 1], [], []>} : vector<8x128xbf16>, vector<128x128xbf16>, vector<8x128xf32> -> vector<8x128xf32>
    %168 = arith.index_cast %165 : i32 to index
    %c0_65 = arith.constant 0 : index
    %169 = vector.load %arg7[%168, %c0_65] : memref<64x128xf32, #tpu.memory_space<vmem>>, vector<8x128xf32>
    %170 = arith.addf %167, %169 : vector<8x128xf32>
    %171 = arith.negf %170 : vector<8x128xf32>
    %172 = math.exp %171 : vector<8x128xf32>
    %cst_66 = arith.constant 1.000000e+00 : f32
    %173 = vector.broadcast %cst_66 : f32 to vector<8x128xf32>
    %174 = arith.addf %173, %172 : vector<8x128xf32>
    %175 = arith.divf %173, %174 : vector<8x128xf32>
    %176 = math.tanh %170 : vector<8x128xf32>
    %177 = arith.select %5, %176, %175 : vector<8x128xi1>, vector<8x128xf32>
    %c96_i32_67 = arith.constant 96 : i32
    %178 = tpu.dynamic_rotate %177 by %c96_i32_67 dim 1 : vector<8x128xf32>, i32 -> vector<8x128xf32>
    %c64_i32_68 = arith.constant 64 : i32
    %179 = tpu.dynamic_rotate %177 by %c64_i32_68 dim 1 : vector<8x128xf32>, i32 -> vector<8x128xf32>
    %c32_i32_69 = arith.constant 32 : i32
    %180 = tpu.dynamic_rotate %177 by %c32_i32_69 dim 1 : vector<8x128xf32>, i32 -> vector<8x128xf32>
    %181 = arith.mulf %178, %159 : vector<8x128xf32>
    %182 = arith.mulf %177, %179 : vector<8x128xf32>
    %183 = arith.addf %181, %182 : vector<8x128xf32>
    %184 = math.tanh %183 : vector<8x128xf32>
    %185 = arith.mulf %180, %184 : vector<8x128xf32>
    %186 = arith.truncf %185 : vector<8x128xf32> to vector<8x128xbf16>
    %187 = arith.index_cast %165 : i32 to index
    %c0_70 = arith.constant 0 : index
    %188 = vector.load %arg8[%187, %c0_70] : memref<64x128xbf16, #tpu.memory_space<vmem>>, vector<8x128xbf16>
    tpu.vector_store %arg8[%187, %c0_70], %186 {strides = array<i32>} : memref<64x128xbf16, #tpu.memory_space<vmem>>, vector<8x128xbf16>,
    %c7_i32 = arith.constant 7 : i32
    %c8_i32_71 = arith.constant 8 : i32
    %189 = arith.muli %c7_i32, %c8_i32_71 : i32
    %190 = arith.truncf %185 : vector<8x128xf32> to vector<8x128xbf16>
    %cst_72 = arith.constant dense<0.000000e+00> : vector<8x128xf32>
    %191 = tpu.matmul %190, %20, %cst_72 {dimension_numbers = #tpu.dot_dimension_numbers<[1], [0], [0], [1], [0, 0, 1, 1], [], []>} : vector<8x128xbf16>, vector<128x128xbf16>, vector<8x128xf32> -> vector<8x128xf32>
    %192 = arith.index_cast %189 : i32 to index
    %c0_73 = arith.constant 0 : index
    %193 = vector.load %arg7[%192, %c0_73] : memref<64x128xf32, #tpu.memory_space<vmem>>, vector<8x128xf32>
    %194 = arith.addf %191, %193 : vector<8x128xf32>
    %195 = arith.negf %194 : vector<8x128xf32>
    %196 = math.exp %195 : vector<8x128xf32>
    %cst_74 = arith.constant 1.000000e+00 : f32
    %197 = vector.broadcast %cst_74 : f32 to vector<8x128xf32>
    %198 = arith.addf %197, %196 : vector<8x128xf32>
    %199 = arith.divf %197, %198 : vector<8x128xf32>
    %200 = math.tanh %194 : vector<8x128xf32>
    %201 = arith.select %5, %200, %199 : vector<8x128xi1>, vector<8x128xf32>
    %c96_i32_75 = arith.constant 96 : i32
    %202 = tpu.dynamic_rotate %201 by %c96_i32_75 dim 1 : vector<8x128xf32>, i32 -> vector<8x128xf32>
    %c64_i32_76 = arith.constant 64 : i32
    %203 = tpu.dynamic_rotate %201 by %c64_i32_76 dim 1 : vector<8x128xf32>, i32 -> vector<8x128xf32>
    %c32_i32_77 = arith.constant 32 : i32
    %204 = tpu.dynamic_rotate %201 by %c32_i32_77 dim 1 : vector<8x128xf32>, i32 -> vector<8x128xf32>
    %205 = arith.mulf %202, %183 : vector<8x128xf32>
    %206 = arith.mulf %201, %203 : vector<8x128xf32>
    %207 = arith.addf %205, %206 : vector<8x128xf32>
    %208 = math.tanh %207 : vector<8x128xf32>
    %209 = arith.mulf %204, %208 : vector<8x128xf32>
    %210 = arith.truncf %209 : vector<8x128xf32> to vector<8x128xbf16>
    %211 = arith.index_cast %189 : i32 to index
    %c0_78 = arith.constant 0 : index
    %212 = vector.load %arg8[%211, %c0_78] : memref<64x128xbf16, #tpu.memory_space<vmem>>, vector<8x128xbf16>
    tpu.vector_store %arg8[%211, %c0_78], %210 {strides = array<i32>} : memref<64x128xbf16, #tpu.memory_space<vmem>>, vector<8x128xbf16>,
    %c8_i32_79 = arith.constant 8 : i32
    %c0_80 = arith.constant 0 : index
    %c0_81 = arith.constant 0 : index
    %c0_82 = arith.constant 0 : index
    %213 = vector.load %arg5[%c0_80, %c0_81, %c0_82] : memref<2x8x128xf32, #tpu.memory_space<vmem>>, vector<1x8x128xf32>
    %214 = vector.shape_cast %213 : vector<1x8x128xf32> to vector<8x128xf32>
    %215 = vector.shape_cast %209 : vector<8x128xf32> to vector<1x8x128xf32>
    tpu.vector_store %arg5[%c0_80, %c0_81, %c0_82], %215 {strides = array<i32>} : memref<2x8x128xf32, #tpu.memory_space<vmem>>, vector<1x8x128xf32>,
    %c0_83 = arith.constant 0 : index
    %c0_84 = arith.constant 0 : index
    %c0_85 = arith.constant 0 : index
    %216 = vector.load %arg6[%c0_83, %c0_84, %c0_85] : memref<2x8x128xf32, #tpu.memory_space<vmem>>, vector<1x8x128xf32>
    %217 = vector.shape_cast %216 : vector<1x8x128xf32> to vector<8x128xf32>
    %218 = vector.shape_cast %207 : vector<8x128xf32> to vector<1x8x128xf32>
    tpu.vector_store %arg6[%c0_83, %c0_84, %c0_85], %218 {strides = array<i32>} : memref<2x8x128xf32, #tpu.memory_space<vmem>>, vector<1x8x128xf32>,
    %c0_86 = arith.constant 0 : index
    %c0_87 = arith.constant 0 : index
    %219 = vector.load %arg8[%c0_86, %c0_87] : memref<64x128xbf16, #tpu.memory_space<vmem>>, vector<64x128xbf16>
    %c1 = arith.constant 1 : index
    %c0_88 = arith.constant 0 : index
    %c0_89 = arith.constant 0 : index
    %220 = vector.load %arg2[%c1, %c0_88, %c0_89] : memref<2x128x128xbf16, #tpu.memory_space<vmem>>, vector<1x128x128xbf16>
    %221 = vector.shape_cast %220 : vector<1x128x128xbf16> to vector<128x128xbf16>
    %cst_90 = arith.constant dense<0.000000e+00> : vector<64x128xf32>
    %222 = tpu.matmul %219, %221, %cst_90 {dimension_numbers = #tpu.dot_dimension_numbers<[1], [0], [0], [1], [0, 0, 1, 1], [], []>} : vector<64x128xbf16>, vector<128x128xbf16>, vector<64x128xf32> -> vector<64x128xf32>
    %c1_91 = arith.constant 1 : index
    %c0_92 = arith.constant 0 : index
    %c0_93 = arith.constant 0 : index
    %223 = vector.load %arg4[%c1_91, %c0_92, %c0_93] : memref<2x8x128xf32, #tpu.memory_space<vmem>>, vector<1x8x128xf32>
    %224 = vector.shape_cast %223 : vector<1x8x128xf32> to vector<8x128xf32>
    %225 = tpu.concatenate %224, %224, %224, %224, %224, %224, %224, %224 in 0 : vector<8x128xf32>, vector<8x128xf32>, vector<8x128xf32>, vector<8x128xf32>, vector<8x128xf32>, vector<8x128xf32>, vector<8x128xf32>, vector<8x128xf32> -> vector<64x128xf32>
    %226 = arith.addf %222, %225 : vector<64x128xf32>
    %c0_94 = arith.constant 0 : index
    %c0_95 = arith.constant 0 : index
    %227 = vector.load %arg7[%c0_94, %c0_95] : memref<64x128xf32, #tpu.memory_space<vmem>>, vector<64x128xf32>
    tpu.vector_store %arg7[%c0_94, %c0_95], %226 {strides = array<i32>} : memref<64x128xf32, #tpu.memory_space<vmem>>, vector<64x128xf32>,
    %c1_96 = arith.constant 1 : index
    %c0_97 = arith.constant 0 : index
    %c0_98 = arith.constant 0 : index
    %228 = vector.load %arg3[%c1_96, %c0_97, %c0_98] : memref<2x128x128xbf16, #tpu.memory_space<vmem>>, vector<1x128x128xbf16>
    %229 = vector.shape_cast %228 : vector<1x128x128xbf16> to vector<128x128xbf16>
    %c0_i32_99 = arith.constant 0 : i32
    %c8_i32_100 = arith.constant 8 : i32
    %230 = arith.muli %c0_i32_99, %c8_i32_100 : i32
    %231 = arith.truncf %8 : vector<8x128xf32> to vector<8x128xbf16>
    %cst_101 = arith.constant dense<0.000000e+00> : vector<8x128xf32>
    %232 = tpu.matmul %231, %229, %cst_101 {dimension_numbers = #tpu.dot_dimension_numbers<[1], [0], [0], [1], [0, 0, 1, 1], [], []>} : vector<8x128xbf16>, vector<128x128xbf16>, vector<8x128xf32> -> vector<8x128xf32>
    %233 = arith.index_cast %230 : i32 to index
    %c0_102 = arith.constant 0 : index
    %234 = vector.load %arg7[%233, %c0_102] : memref<64x128xf32, #tpu.memory_space<vmem>>, vector<8x128xf32>
    %235 = arith.addf %232, %234 : vector<8x128xf32>
    %236 = arith.negf %235 : vector<8x128xf32>
    %237 = math.exp %236 : vector<8x128xf32>
    %cst_103 = arith.constant 1.000000e+00 : f32
    %238 = vector.broadcast %cst_103 : f32 to vector<8x128xf32>
    %239 = arith.addf %238, %237 : vector<8x128xf32>
    %240 = arith.divf %238, %239 : vector<8x128xf32>
    %241 = math.tanh %235 : vector<8x128xf32>
    %242 = arith.select %5, %241, %240 : vector<8x128xi1>, vector<8x128xf32>
    %c96_i32_104 = arith.constant 96 : i32
    %243 = tpu.dynamic_rotate %242 by %c96_i32_104 dim 1 : vector<8x128xf32>, i32 -> vector<8x128xf32>
    %c64_i32_105 = arith.constant 64 : i32
    %244 = tpu.dynamic_rotate %242 by %c64_i32_105 dim 1 : vector<8x128xf32>, i32 -> vector<8x128xf32>
    %c32_i32_106 = arith.constant 32 : i32
    %245 = tpu.dynamic_rotate %242 by %c32_i32_106 dim 1 : vector<8x128xf32>, i32 -> vector<8x128xf32>
    %246 = arith.mulf %243, %8 : vector<8x128xf32>
    %247 = arith.mulf %242, %244 : vector<8x128xf32>
    %248 = arith.addf %246, %247 : vector<8x128xf32>
    %249 = math.tanh %248 : vector<8x128xf32>
    %250 = arith.mulf %245, %249 : vector<8x128xf32>
    %c1_i32_107 = arith.constant 1 : i32
    %c8_i32_108 = arith.constant 8 : i32
    %251 = arith.muli %c1_i32_107, %c8_i32_108 : i32
    %252 = arith.truncf %250 : vector<8x128xf32> to vector<8x128xbf16>
    %cst_109 = arith.constant dense<0.000000e+00> : vector<8x128xf32>
    %253 = tpu.matmul %252, %229, %cst_109 {dimension_numbers = #tpu.dot_dimension_numbers<[1], [0], [0], [1], [0, 0, 1, 1], [], []>} : vector<8x128xbf16>, vector<128x128xbf16>, vector<8x128xf32> -> vector<8x128xf32>
    %254 = arith.index_cast %251 : i32 to index
    %c0_110 = arith.constant 0 : index
    %255 = vector.load %arg7[%254, %c0_110] : memref<64x128xf32, #tpu.memory_space<vmem>>, vector<8x128xf32>
    %256 = arith.addf %253, %255 : vector<8x128xf32>
    %257 = arith.negf %256 : vector<8x128xf32>
    %258 = math.exp %257 : vector<8x128xf32>
    %cst_111 = arith.constant 1.000000e+00 : f32
    %259 = vector.broadcast %cst_111 : f32 to vector<8x128xf32>
    %260 = arith.addf %259, %258 : vector<8x128xf32>
    %261 = arith.divf %259, %260 : vector<8x128xf32>
    %262 = math.tanh %256 : vector<8x128xf32>
    %263 = arith.select %5, %262, %261 : vector<8x128xi1>, vector<8x128xf32>
    %c96_i32_112 = arith.constant 96 : i32
    %264 = tpu.dynamic_rotate %263 by %c96_i32_112 dim 1 : vector<8x128xf32>, i32 -> vector<8x128xf32>
    %c64_i32_113 = arith.constant 64 : i32
    %265 = tpu.dynamic_rotate %263 by %c64_i32_113 dim 1 : vector<8x128xf32>, i32 -> vector<8x128xf32>
    %c32_i32_114 = arith.constant 32 : i32
    %266 = tpu.dynamic_rotate %263 by %c32_i32_114 dim 1 : vector<8x128xf32>, i32 -> vector<8x128xf32>
    %267 = arith.mulf %264, %248 : vector<8x128xf32>
    %268 = arith.mulf %263, %265 : vector<8x128xf32>
    %269 = arith.addf %267, %268 : vector<8x128xf32>
    %270 = math.tanh %269 : vector<8x128xf32>
    %271 = arith.mulf %266, %270 : vector<8x128xf32>
    %c2_i32_115 = arith.constant 2 : i32
    %c8_i32_116 = arith.constant 8 : i32
    %272 = arith.muli %c2_i32_115, %c8_i32_116 : i32
    %273 = arith.truncf %271 : vector<8x128xf32> to vector<8x128xbf16>
    %cst_117 = arith.constant dense<0.000000e+00> : vector<8x128xf32>
    %274 = tpu.matmul %273, %229, %cst_117 {dimension_numbers = #tpu.dot_dimension_numbers<[1], [0], [0], [1], [0, 0, 1, 1], [], []>} : vector<8x128xbf16>, vector<128x128xbf16>, vector<8x128xf32> -> vector<8x128xf32>
    %275 = arith.index_cast %272 : i32 to index
    %c0_118 = arith.constant 0 : index
    %276 = vector.load %arg7[%275, %c0_118] : memref<64x128xf32, #tpu.memory_space<vmem>>, vector<8x128xf32>
    %277 = arith.addf %274, %276 : vector<8x128xf32>
    %278 = arith.negf %277 : vector<8x128xf32>
    %279 = math.exp %278 : vector<8x128xf32>
    %cst_119 = arith.constant 1.000000e+00 : f32
    %280 = vector.broadcast %cst_119 : f32 to vector<8x128xf32>
    %281 = arith.addf %280, %279 : vector<8x128xf32>
    %282 = arith.divf %280, %281 : vector<8x128xf32>
    %283 = math.tanh %277 : vector<8x128xf32>
    %284 = arith.select %5, %283, %282 : vector<8x128xi1>, vector<8x128xf32>
    %c96_i32_120 = arith.constant 96 : i32
    %285 = tpu.dynamic_rotate %284 by %c96_i32_120 dim 1 : vector<8x128xf32>, i32 -> vector<8x128xf32>
    %c64_i32_121 = arith.constant 64 : i32
    %286 = tpu.dynamic_rotate %284 by %c64_i32_121 dim 1 : vector<8x128xf32>, i32 -> vector<8x128xf32>
    %c32_i32_122 = arith.constant 32 : i32
    %287 = tpu.dynamic_rotate %284 by %c32_i32_122 dim 1 : vector<8x128xf32>, i32 -> vector<8x128xf32>
    %288 = arith.mulf %285, %269 : vector<8x128xf32>
    %289 = arith.mulf %284, %286 : vector<8x128xf32>
    %290 = arith.addf %288, %289 : vector<8x128xf32>
    %291 = math.tanh %290 : vector<8x128xf32>
    %292 = arith.mulf %287, %291 : vector<8x128xf32>
    %c3_i32_123 = arith.constant 3 : i32
    %c8_i32_124 = arith.constant 8 : i32
    %293 = arith.muli %c3_i32_123, %c8_i32_124 : i32
    %294 = arith.truncf %292 : vector<8x128xf32> to vector<8x128xbf16>
    %cst_125 = arith.constant dense<0.000000e+00> : vector<8x128xf32>
    %295 = tpu.matmul %294, %229, %cst_125 {dimension_numbers = #tpu.dot_dimension_numbers<[1], [0], [0], [1], [0, 0, 1, 1], [], []>} : vector<8x128xbf16>, vector<128x128xbf16>, vector<8x128xf32> -> vector<8x128xf32>
    %296 = arith.index_cast %293 : i32 to index
    %c0_126 = arith.constant 0 : index
    %297 = vector.load %arg7[%296, %c0_126] : memref<64x128xf32, #tpu.memory_space<vmem>>, vector<8x128xf32>
    %298 = arith.addf %295, %297 : vector<8x128xf32>
    %299 = arith.negf %298 : vector<8x128xf32>
    %300 = math.exp %299 : vector<8x128xf32>
    %cst_127 = arith.constant 1.000000e+00 : f32
    %301 = vector.broadcast %cst_127 : f32 to vector<8x128xf32>
    %302 = arith.addf %301, %300 : vector<8x128xf32>
    %303 = arith.divf %301, %302 : vector<8x128xf32>
    %304 = math.tanh %298 : vector<8x128xf32>
    %305 = arith.select %5, %304, %303 : vector<8x128xi1>, vector<8x128xf32>
    %c96_i32_128 = arith.constant 96 : i32
    %306 = tpu.dynamic_rotate %305 by %c96_i32_128 dim 1 : vector<8x128xf32>, i32 -> vector<8x128xf32>
    %c64_i32_129 = arith.constant 64 : i32
    %307 = tpu.dynamic_rotate %305 by %c64_i32_129 dim 1 : vector<8x128xf32>, i32 -> vector<8x128xf32>
    %c32_i32_130 = arith.constant 32 : i32
    %308 = tpu.dynamic_rotate %305 by %c32_i32_130 dim 1 : vector<8x128xf32>, i32 -> vector<8x128xf32>
    %309 = arith.mulf %306, %290 : vector<8x128xf32>
    %310 = arith.mulf %305, %307 : vector<8x128xf32>
    %311 = arith.addf %309, %310 : vector<8x128xf32>
    %312 = math.tanh %311 : vector<8x128xf32>
    %313 = arith.mulf %308, %312 : vector<8x128xf32>
    %c4_i32_131 = arith.constant 4 : i32
    %c8_i32_132 = arith.constant 8 : i32
    %314 = arith.muli %c4_i32_131, %c8_i32_132 : i32
    %315 = arith.truncf %313 : vector<8x128xf32> to vector<8x128xbf16>
    %cst_133 = arith.constant dense<0.000000e+00> : vector<8x128xf32>
    %316 = tpu.matmul %315, %229, %cst_133 {dimension_numbers = #tpu.dot_dimension_numbers<[1], [0], [0], [1], [0, 0, 1, 1], [], []>} : vector<8x128xbf16>, vector<128x128xbf16>, vector<8x128xf32> -> vector<8x128xf32>
    %317 = arith.index_cast %314 : i32 to index
    %c0_134 = arith.constant 0 : index
    %318 = vector.load %arg7[%317, %c0_134] : memref<64x128xf32, #tpu.memory_space<vmem>>, vector<8x128xf32>
    %319 = arith.addf %316, %318 : vector<8x128xf32>
    %320 = arith.negf %319 : vector<8x128xf32>
    %321 = math.exp %320 : vector<8x128xf32>
    %cst_135 = arith.constant 1.000000e+00 : f32
    %322 = vector.broadcast %cst_135 : f32 to vector<8x128xf32>
    %323 = arith.addf %322, %321 : vector<8x128xf32>
    %324 = arith.divf %322, %323 : vector<8x128xf32>
    %325 = math.tanh %319 : vector<8x128xf32>
    %326 = arith.select %5, %325, %324 : vector<8x128xi1>, vector<8x128xf32>
    %c96_i32_136 = arith.constant 96 : i32
    %327 = tpu.dynamic_rotate %326 by %c96_i32_136 dim 1 : vector<8x128xf32>, i32 -> vector<8x128xf32>
    %c64_i32_137 = arith.constant 64 : i32
    %328 = tpu.dynamic_rotate %326 by %c64_i32_137 dim 1 : vector<8x128xf32>, i32 -> vector<8x128xf32>
    %c32_i32_138 = arith.constant 32 : i32
    %329 = tpu.dynamic_rotate %326 by %c32_i32_138 dim 1 : vector<8x128xf32>, i32 -> vector<8x128xf32>
    %330 = arith.mulf %327, %311 : vector<8x128xf32>
    %331 = arith.mulf %326, %328 : vector<8x128xf32>
    %332 = arith.addf %330, %331 : vector<8x128xf32>
    %333 = math.tanh %332 : vector<8x128xf32>
    %334 = arith.mulf %329, %333 : vector<8x128xf32>
    %c5_i32_139 = arith.constant 5 : i32
    %c8_i32_140 = arith.constant 8 : i32
    %335 = arith.muli %c5_i32_139, %c8_i32_140 : i32
    %336 = arith.truncf %334 : vector<8x128xf32> to vector<8x128xbf16>
    %cst_141 = arith.constant dense<0.000000e+00> : vector<8x128xf32>
    %337 = tpu.matmul %336, %229, %cst_141 {dimension_numbers = #tpu.dot_dimension_numbers<[1], [0], [0], [1], [0, 0, 1, 1], [], []>} : vector<8x128xbf16>, vector<128x128xbf16>, vector<8x128xf32> -> vector<8x128xf32>
    %338 = arith.index_cast %335 : i32 to index
    %c0_142 = arith.constant 0 : index
    %339 = vector.load %arg7[%338, %c0_142] : memref<64x128xf32, #tpu.memory_space<vmem>>, vector<8x128xf32>
    %340 = arith.addf %337, %339 : vector<8x128xf32>
    %341 = arith.negf %340 : vector<8x128xf32>
    %342 = math.exp %341 : vector<8x128xf32>
    %cst_143 = arith.constant 1.000000e+00 : f32
    %343 = vector.broadcast %cst_143 : f32 to vector<8x128xf32>
    %344 = arith.addf %343, %342 : vector<8x128xf32>
    %345 = arith.divf %343, %344 : vector<8x128xf32>
    %346 = math.tanh %340 : vector<8x128xf32>
    %347 = arith.select %5, %346, %345 : vector<8x128xi1>, vector<8x128xf32>
    %c96_i32_144 = arith.constant 96 : i32
    %348 = tpu.dynamic_rotate %347 by %c96_i32_144 dim 1 : vector<8x128xf32>, i32 -> vector<8x128xf32>
    %c64_i32_145 = arith.constant 64 : i32
    %349 = tpu.dynamic_rotate %347 by %c64_i32_145 dim 1 : vector<8x128xf32>, i32 -> vector<8x128xf32>
    %c32_i32_146 = arith.constant 32 : i32
    %350 = tpu.dynamic_rotate %347 by %c32_i32_146 dim 1 : vector<8x128xf32>, i32 -> vector<8x128xf32>
    %351 = arith.mulf %348, %332 : vector<8x128xf32>
    %352 = arith.mulf %347, %349 : vector<8x128xf32>
    %353 = arith.addf %351, %352 : vector<8x128xf32>
    %354 = math.tanh %353 : vector<8x128xf32>
    %355 = arith.mulf %350, %354 : vector<8x128xf32>
    %c6_i32_147 = arith.constant 6 : i32
    %c8_i32_148 = arith.constant 8 : i32
    %356 = arith.muli %c6_i32_147, %c8_i32_148 : i32
    %357 = arith.truncf %355 : vector<8x128xf32> to vector<8x128xbf16>
    %cst_149 = arith.constant dense<0.000000e+00> : vector<8x128xf32>
    %358 = tpu.matmul %357, %229, %cst_149 {dimension_numbers = #tpu.dot_dimension_numbers<[1], [0], [0], [1], [0, 0, 1, 1], [], []>} : vector<8x128xbf16>, vector<128x128xbf16>, vector<8x128xf32> -> vector<8x128xf32>
    %359 = arith.index_cast %356 : i32 to index
    %c0_150 = arith.constant 0 : index
    %360 = vector.load %arg7[%359, %c0_150] : memref<64x128xf32, #tpu.memory_space<vmem>>, vector<8x128xf32>
    %361 = arith.addf %358, %360 : vector<8x128xf32>
    %362 = arith.negf %361 : vector<8x128xf32>
    %363 = math.exp %362 : vector<8x128xf32>
    %cst_151 = arith.constant 1.000000e+00 : f32
    %364 = vector.broadcast %cst_151 : f32 to vector<8x128xf32>
    %365 = arith.addf %364, %363 : vector<8x128xf32>
    %366 = arith.divf %364, %365 : vector<8x128xf32>
    %367 = math.tanh %361 : vector<8x128xf32>
    %368 = arith.select %5, %367, %366 : vector<8x128xi1>, vector<8x128xf32>
    %c96_i32_152 = arith.constant 96 : i32
    %369 = tpu.dynamic_rotate %368 by %c96_i32_152 dim 1 : vector<8x128xf32>, i32 -> vector<8x128xf32>
    %c64_i32_153 = arith.constant 64 : i32
    %370 = tpu.dynamic_rotate %368 by %c64_i32_153 dim 1 : vector<8x128xf32>, i32 -> vector<8x128xf32>
    %c32_i32_154 = arith.constant 32 : i32
    %371 = tpu.dynamic_rotate %368 by %c32_i32_154 dim 1 : vector<8x128xf32>, i32 -> vector<8x128xf32>
    %372 = arith.mulf %369, %353 : vector<8x128xf32>
    %373 = arith.mulf %368, %370 : vector<8x128xf32>
    %374 = arith.addf %372, %373 : vector<8x128xf32>
    %375 = math.tanh %374 : vector<8x128xf32>
    %376 = arith.mulf %371, %375 : vector<8x128xf32>
    %c7_i32_155 = arith.constant 7 : i32
    %c8_i32_156 = arith.constant 8 : i32
    %377 = arith.muli %c7_i32_155, %c8_i32_156 : i32
    %378 = arith.truncf %376 : vector<8x128xf32> to vector<8x128xbf16>
    %cst_157 = arith.constant dense<0.000000e+00> : vector<8x128xf32>
    %379 = tpu.matmul %378, %229, %cst_157 {dimension_numbers = #tpu.dot_dimension_numbers<[1], [0], [0], [1], [0, 0, 1, 1], [], []>} : vector<8x128xbf16>, vector<128x128xbf16>, vector<8x128xf32> -> vector<8x128xf32>
    %380 = arith.index_cast %377 : i32 to index
    %c0_158 = arith.constant 0 : index
    %381 = vector.load %arg7[%380, %c0_158] : memref<64x128xf32, #tpu.memory_space<vmem>>, vector<8x128xf32>
    %382 = arith.addf %379, %381 : vector<8x128xf32>
    %383 = arith.negf %382 : vector<8x128xf32>
    %384 = math.exp %383 : vector<8x128xf32>
    %cst_159 = arith.constant 1.000000e+00 : f32
    %385 = vector.broadcast %cst_159 : f32 to vector<8x128xf32>
    %386 = arith.addf %385, %384 : vector<8x128xf32>
    %387 = arith.divf %385, %386 : vector<8x128xf32>
    %388 = math.tanh %382 : vector<8x128xf32>
    %389 = arith.select %5, %388, %387 : vector<8x128xi1>, vector<8x128xf32>
    %c96_i32_160 = arith.constant 96 : i32
    %390 = tpu.dynamic_rotate %389 by %c96_i32_160 dim 1 : vector<8x128xf32>, i32 -> vector<8x128xf32>
    %c64_i32_161 = arith.constant 64 : i32
    %391 = tpu.dynamic_rotate %389 by %c64_i32_161 dim 1 : vector<8x128xf32>, i32 -> vector<8x128xf32>
    %c32_i32_162 = arith.constant 32 : i32
    %392 = tpu.dynamic_rotate %389 by %c32_i32_162 dim 1 : vector<8x128xf32>, i32 -> vector<8x128xf32>
    %393 = arith.mulf %390, %374 : vector<8x128xf32>
    %394 = arith.mulf %389, %391 : vector<8x128xf32>
    %395 = arith.addf %393, %394 : vector<8x128xf32>
    %396 = math.tanh %395 : vector<8x128xf32>
    %397 = arith.mulf %392, %396 : vector<8x128xf32>
    %c8_i32_163 = arith.constant 8 : i32
    %c1_164 = arith.constant 1 : index
    %c0_165 = arith.constant 0 : index
    %c0_166 = arith.constant 0 : index
    %398 = vector.load %arg5[%c1_164, %c0_165, %c0_166] : memref<2x8x128xf32, #tpu.memory_space<vmem>>, vector<1x8x128xf32>
    %399 = vector.shape_cast %398 : vector<1x8x128xf32> to vector<8x128xf32>
    %400 = vector.shape_cast %397 : vector<8x128xf32> to vector<1x8x128xf32>
    tpu.vector_store %arg5[%c1_164, %c0_165, %c0_166], %400 {strides = array<i32>} : memref<2x8x128xf32, #tpu.memory_space<vmem>>, vector<1x8x128xf32>,
    %c1_167 = arith.constant 1 : index
    %c0_168 = arith.constant 0 : index
    %c0_169 = arith.constant 0 : index
    %401 = vector.load %arg6[%c1_167, %c0_168, %c0_169] : memref<2x8x128xf32, #tpu.memory_space<vmem>>, vector<1x8x128xf32>
    %402 = vector.shape_cast %401 : vector<1x8x128xf32> to vector<8x128xf32>
    %403 = vector.shape_cast %395 : vector<8x128xf32> to vector<1x8x128xf32>
    tpu.vector_store %arg6[%c1_167, %c0_168, %c0_169], %403 {strides = array<i32>} : memref<2x8x128xf32, #tpu.memory_space<vmem>>, vector<1x8x128xf32>,
    return
  }
  func.func @transform_0(%arg0: i32) -> (i32, i32, i32) {
    %c0_i32 = arith.constant 0 : i32
    %c0_i32_0 = arith.constant 0 : i32
    %c0_i32_1 = arith.constant 0 : i32
    return %arg0, %c0_i32, %c0_i32_0 : i32, i32, i32
  }
  func.func @transform_1(%arg0: i32) -> (i32, i32, i32) {
    %c0_i32 = arith.constant 0 : i32
    %c0_i32_0 = arith.constant 0 : i32
    %c0_i32_1 = arith.constant 0 : i32
    %c0_i32_2 = arith.constant 0 : i32
    return %c0_i32, %c0_i32_0, %c0_i32_1 : i32, i32, i32
  }
  func.func @transform_2(%arg0: i32) -> (i32, i32, i32) {
    %c0_i32 = arith.constant 0 : i32
    %c0_i32_0 = arith.constant 0 : i32
    %c0_i32_1 = arith.constant 0 : i32
    %c0_i32_2 = arith.constant 0 : i32
    return %c0_i32, %c0_i32_0, %c0_i32_1 : i32, i32, i32
  }
  func.func @transform_3(%arg0: i32) -> (i32, i32, i32) {
    %c0_i32 = arith.constant 0 : i32
    %c0_i32_0 = arith.constant 0 : i32
    %c0_i32_1 = arith.constant 0 : i32
    %c0_i32_2 = arith.constant 0 : i32
    return %c0_i32, %c0_i32_0, %c0_i32_1 : i32, i32, i32
  }
  func.func @transform_4(%arg0: i32) -> (i32, i32, i32) {
    %c0_i32 = arith.constant 0 : i32
    %c0_i32_0 = arith.constant 0 : i32
    %c0_i32_1 = arith.constant 0 : i32
    return %c0_i32, %arg0, %c0_i32_0 : i32, i32, i32
  }
  func.func @transform_5(%arg0: i32) -> (i32, i32, i32) {
    %c0_i32 = arith.constant 0 : i32
    %c0_i32_0 = arith.constant 0 : i32
    %c0_i32_1 = arith.constant 0 : i32
    return %c0_i32, %arg0, %c0_i32_0 : i32, i32, i32
  }
}

</mosaic_0001>

<bundles_post_ra>
// kernel: encoder_forward.1
= control target key start
LH: loop header
LB: loop body
LE: loop exit
PB: predicated region body
PF: predicated region fallthrough
CT: control target
= control target key end

     0   :  { %v1588_v2 = vmov 0   ;;  %v20_v27 = vlaneseq  ;;  %s1589_s29 = smov 32   ;;  %s1590_s30 = smov 96   ;;  %s2023_s1 = inlined_call_operand.vmem [shape: bf16[2,128,128], index: 1, kind: input, shape index: {}]   ;;  %s2024_s2 = inlined_call_operand.vmem [shape: bf16[2,128,128], index: 2, kind: input, shape index: {}]   ;;  %s2025_s0 = inlined_call_operand.vmem [shape: bf16[1,64,128], index: 0, kind: input, shape index: {}]   ;;  %s2026_s3 = inlined_call_operand.vmem [shape: f32[2,8,128], index: 3, kind: input, shape index: {}]   ;;  %s2027_s5 = inlined_call_operand.vmem [shape: f32[2,8,128], index: 5, kind: output, shape index: {1}]   ;;  %s2028_s4 = inlined_call_operand.vmem [shape: f32[2,8,128], index: 4, kind: output, shape index: {0}]  }
   0x1   :  { %v1427_v0 = vld [vmem:[%s2023_s1 + $0x38] sm:$0xff]  ;;  %25 = vst [vmem:[#allocation3] sm:$0xf] %v1588_v2  ;;  %v1426_v3 = vld [vmem:[%s2023_s1 + $0x30] sm:$0xff]  ;;  %v1425_v5 = vld [vmem:[%s2023_s1 + $0x28] sm:$0xff]  ;;  %s1591_s6 = smov 64  }
   0x2   :  { %v1628_v1 = vld [vmem:[%s2024_s2 + $0x38] sm:$0xff]  ;;  %130 = vmatpush.bf16.msra.mxu0 %v1427_v0  ;;  %v1638_v4 = vld [vmem:[%s2024_s2 + $0x30] sm:$0xff]  ;;  %26 = vst [vmem:[#allocation3 + $0x4] sm:$0xf] %v1588_v2  ;;  %v1653_v6 = vld [vmem:[%s2024_s2 + $0x28] sm:$0xff]  ;;  %v21_v29 = vand.u32 127, %v20_v27 }
   0x3   :  { %232 = vmatpush.bf16.msra.mxu1 %v1628_v1  ;;  %27 = vst [vmem:[#allocation3 + $0x8] sm:$0xf] %v1588_v2  ;;  %280 = vmatpush.bf16.msra.mxu2 %v1628_v1  ;;  %v1424_v7 = vld [vmem:[%s2023_s1 + $0x20] sm:$0xff]  ;;  %v1423_v9 = vld [vmem:[%s2023_s1 + $0x18] sm:$0xff]  ;;  %v1422_v11 = vld [vmem:[%s2023_s1 + $0x10] sm:$0xff] }
   0x4   :  { %328 = vmatpush.bf16.msra.mxu3 %v1628_v1  ;;  %28 = vst [vmem:[#allocation3 + $0xc] sm:$0xf] %v1588_v2  ;;  %v1667_v8 = vld [vmem:[%s2024_s2 + $0x20] sm:$0xff]  ;;  %v1678_v10 = vld [vmem:[%s2024_s2 + $0x18] sm:$0xff]  ;;  %v1430_v12 = vld [vmem:[%s2024_s2 + $0x10] sm:$0xff]  ;;  %vm22_vm0 = vcmp.ge.s32.totalorder %v21_v29, 64 }
   0x5   :  { %29 = vst [vmem:[#allocation3 + $0x10] sm:$0xf] %v1588_v2  ;;  %v1421_v13 = vld [vmem:[%s2023_s1 + $0x8] sm:$0xff]  ;;  %v1420_v15 = vld [vmem:[%s2023_s1] sm:$0xff]  ;;  %vm23_vm1 = vcmp.lt.s32.totalorder %v21_v29, 96 }
   0x6   :  { %131 = vmatpush.bf16.msra.mxu0 %v1426_v3  ;;  %30 = vst [vmem:[#allocation3 + $0x14] sm:$0xf] %v1588_v2  ;;  %v1429_v14 = vld [vmem:[%s2024_s2 + $0x8] sm:$0xff]  ;;  %v1428_v16 = vld [vmem:[%s2024_s2] sm:$0xff]  ;;  %vm1738_vm3 = vmand %vm22_vm0, %vm23_vm1 }
   0x7   :  { %233 = vmatpush.bf16.msra.mxu1 %v1638_v4  ;;  %31 = vst [vmem:[#allocation3 + $0x18] sm:$0xf] %v1588_v2  ;;  %281 = vmatpush.bf16.msra.mxu2 %v1638_v4  ;;  %v1416_v17 = vld [vmem:[%s2025_s0] sm:$0xff] }
   0x8   :  { %329 = vmatpush.bf16.msra.mxu3 %v1638_v4  ;;  %32 = vst [vmem:[#allocation3 + $0x1c] sm:$0xf] %v1588_v2  ;;  %v1735_v18 = vld [vmem:[%s2026_s3] sm:$0xff] }
   0xa   :  { %132 = vmatpush.bf16.msra.mxu0 %v1425_v5 }
   0xb   :  { %234 = vmatpush.bf16.msra.mxu1 %v1653_v6  ;;  %282 = vmatpush.bf16.msra.mxu2 %v1653_v6 }
   0xc   :  { %330 = vmatpush.bf16.msra.mxu3 %v1653_v6 }
   0xe   :  { %133 = vmatpush.bf16.msra.mxu0 %v1424_v7 }
   0xf   :  { %235 = vmatpush.bf16.msra.mxu1 %v1667_v8  ;;  %283 = vmatpush.bf16.msra.mxu2 %v1667_v8 }
  0x10   :  { %331 = vmatpush.bf16.msra.mxu3 %v1667_v8 }
  0x12   :  { %134 = vmatpush.bf16.msra.mxu0 %v1423_v9 }
  0x13   :  { %236 = vmatpush.bf16.msra.mxu1 %v1678_v10  ;;  %284 = vmatpush.bf16.msra.mxu2 %v1678_v10 }
  0x14   :  { %332 = vmatpush.bf16.msra.mxu3 %v1678_v10 }
  0x16   :  { %135 = vmatpush.bf16.msra.mxu0 %v1422_v11 }
  0x17   :  { %237 = vmatpush.bf16.msra.mxu1 %v1430_v12  ;;  %285 = vmatpush.bf16.msra.mxu2 %v1430_v12 }
  0x18   :  { %333 = vmatpush.bf16.msra.mxu3 %v1430_v12 }
  0x1a   :  { %136 = vmatpush.bf16.msra.mxu0 %v1421_v13 }
  0x1b   :  { %238 = vmatpush.bf16.msra.mxu1 %v1429_v14  ;;  %286 = vmatpush.bf16.msra.mxu2 %v1429_v14 }
  0x1c   :  { %334 = vmatpush.bf16.msra.mxu3 %v1429_v14 }
  0x1e   :  { %137 = vmatpush.bf16.msra.mxu0 %v1420_v15 }
  0x1f   :  { %239 = vmatpush.bf16.msra.mxu1 %v1428_v16  ;;  %287 = vmatpush.bf16.msra.mxu2 %v1428_v16 }
  0x20   :  { %335 = vmatpush.bf16.msra.mxu3 %v1428_v16 }
  0x21   :  { %138 = vmatmul.bf16.vlgmr.msra.gmra.mxu0 %v1416_v17 }
  0x22   :  { %240 = vmatmul.bf16.vlgmr.msra.gmra.mxu1 %v1588_v2  ;;  %520 = vmatpush.bf16.msrb.mxu0 %v1628_v1 }
  0x23   :  { %376 = vmatpush.bf16.msrb.mxu1 %v1628_v1  ;;  %424 = vmatpush.bf16.msrb.mxu2 %v1628_v1 }
  0x24   :  { %472 = vmatpush.bf16.msrb.mxu3 %v1628_v1 }
  0x26   :  { %521 = vmatpush.bf16.msrb.mxu0 %v1638_v4 }
  0x27   :  { %377 = vmatpush.bf16.msrb.mxu1 %v1638_v4  ;;  %425 = vmatpush.bf16.msrb.mxu2 %v1638_v4 }
  0x28   :  { %473 = vmatpush.bf16.msrb.mxu3 %v1638_v4 }
  0x2a   :  { %522 = vmatpush.bf16.msrb.mxu0 %v1653_v6 }
  0x2b   :  { %378 = vmatpush.bf16.msrb.mxu1 %v1653_v6  ;;  %426 = vmatpush.bf16.msrb.mxu2 %v1653_v6 }
  0x2c   :  { %474 = vmatpush.bf16.msrb.mxu3 %v1653_v6 }
  0x2e   :  { %523 = vmatpush.bf16.msrb.mxu0 %v1667_v8 }
  0x2f   :  { %379 = vmatpush.bf16.msrb.mxu1 %v1667_v8  ;;  %427 = vmatpush.bf16.msrb.mxu2 %v1667_v8 }
  0x30   :  { %475 = vmatpush.bf16.msrb.mxu3 %v1667_v8 }
  0x32   :  { %524 = vmatpush.bf16.msrb.mxu0 %v1678_v10 }
  0x33   :  { %380 = vmatpush.bf16.msrb.mxu1 %v1678_v10  ;;  %428 = vmatpush.bf16.msrb.mxu2 %v1678_v10 }
  0x34   :  { %476 = vmatpush.bf16.msrb.mxu3 %v1678_v10 }
  0x36   :  { %525 = vmatpush.bf16.msrb.mxu0 %v1430_v12 }
  0x37   :  { %381 = vmatpush.bf16.msrb.mxu1 %v1430_v12  ;;  %429 = vmatpush.bf16.msrb.mxu2 %v1430_v12 }
  0x38   :  { %477 = vmatpush.bf16.msrb.mxu3 %v1430_v12 }
  0x3a   :  { %526 = vmatpush.bf16.msrb.mxu0 %v1429_v14 }
  0x3b   :  { %382 = vmatpush.bf16.msrb.mxu1 %v1429_v14  ;;  %430 = vmatpush.bf16.msrb.mxu2 %v1429_v14 }
  0x3c   :  { %478 = vmatpush.bf16.msrb.mxu3 %v1429_v14 }
  0x3e   :  { %527 = vmatpush.bf16.msrb.mxu0 %v1428_v16 }
  0x3f   :  { %383 = vmatpush.bf16.msrb.mxu1 %v1428_v16  ;;  %431 = vmatpush.bf16.msrb.mxu2 %v1428_v16 }
  0x40   :  { %479 = vmatpush.bf16.msrb.mxu3 %v1428_v16 }
  0x43   :  { %568 = vmatpush.bf16.msra.mxu1 %v1628_v1 }
  0x47   :  { %569 = vmatpush.bf16.msra.mxu1 %v1638_v4 }
  0x4b   :  { %570 = vmatpush.bf16.msra.mxu1 %v1653_v6 }
  0x4f   :  { %571 = vmatpush.bf16.msra.mxu1 %v1667_v8  ;;  %v1417_v8 = vld [vmem:[%s2025_s0 + $0x8] sm:$0xff] }
  0x50   :  { %143 = vmatmul.bf16.gmra.mxu0 %v1417_v8  ;;  %v1445_v8 = vld [vmem:[%s2023_s1 + $0x68] sm:$0xff] }
  0x53   :  { %572 = vmatpush.bf16.msra.mxu1 %v1678_v10 }
  0x57   :  { %573 = vmatpush.bf16.msra.mxu1 %v1430_v12 }
  0x5b   :  { %574 = vmatpush.bf16.msra.mxu1 %v1429_v14 }
  0x5f   :  { %575 = vmatpush.bf16.msra.mxu1 %v1428_v16 }
  0x9e   :  { %v139_v19 = vpop.f32.mrf.mxu0 }
  0x9f   :  { %v241_v20 = vpop.f32.mrf.mxu1  ;;  %v140_v21 = vadd.f32 %v139_v19, %v1735_v18 }
  0xa1   :  { %v242_v22 = vadd.f32 %v241_v20, %v140_v21 }
  0xa3   :  { %v1285_v23 = vmul.f32 -1.442695, %v242_v22 }
  0xa5   :  { %1460 = vpow2.f32 %v1285_v23 }
  0xa6   :  { %v141_v51 = vpop.f32.mrf.mxu0 }
  0xa7   :  { %v243_v24 = vpop.f32.mrf.mxu1  ;;  %v142_v52 = vadd.f32 %v141_v51, %v1735_v18 }
  0xab   :  { %v1461_v25 = vpop.eup %1460 }
  0xac   :  { %v248_v26 = vadd.f32 1.0, %v1461_v25 }
  0xae   :  { %1462 = vrcp.f32 %v248_v26  ;;  %v260_v32 = vand.u32 2147483648, %v248_v26  ;;  %v258_v34 = vand.u32 2147483647, %v248_v26  ;;  %vm254_vm4 = vweird.f32 %v248_v26 }
  0xaf   :  { %1464 = vtanh.f32 %v242_v22 }
  0xb0   :  { %v261_v37 = vor.u32 1.1754944e-38, %v260_v32  ;;  %vm259_vm6 = vcmp.eq.f32.partialorder %v258_v34, 8.507059e+37 }
  0xb4   :  { %v1463_v28 = vpop.eup %1462 }
  0xb5   :  { %v250_v30 = vmul.f32 %v1463_v28, %v248_v26  ;;  %vm255_vm2 = vweird.f32 %v1463_v28  ;;  %v1465_v39 = vpop.eup %1464 }
  0xb6   :  { %vm256_vm5 = vmor %vm254_vm4, %vm255_vm2 }
  0xb7   :  { %v251_v31 = vsub.f32 1.0, %v250_v30 }
  0xb9   :  { %v252_v33 = vmul.f32 %v1463_v28, %v251_v31 }
  0xbb   :  { %v253_v36 = vadd.f32 %v1463_v28, %v252_v33 }
  0xbd   :  { %v257_v38 = vsel %vm256_vm5, %v1463_v28, %v253_v36 }
  0xbe   :  { %v262_v40 = vsel %vm259_vm6, %v261_v37, %v257_v38 }
  0xbf   :  { %v265_v41 = vsel %vm1738_vm3, %v1465_v39, %v262_v40 }
  0xc0   :  { %270 = vrot.lane.b32.xlu1 %v265_v41, %s1589_s29  ;;  %266 = vrot.lane.b32.xlu0 %v265_v41, %s1590_s30 }
  0xc8   :  { %268 = vrot.lane.b32.xlu0 %v265_v41, %s1591_s6 }
  0xcd   :  { %v144_v19 = vpop.f32.mrf.mxu0 }
  0xce   :  { %v145_v20 = vadd.f32 %v144_v19, %v1735_v18 }
 0x132   :  { %v267_v42 = vpop.permute.xlu0 %266  ;;  %v271_v48 = vpop.permute.xlu1 %270 }
 0x133   :  { %v272_v44 = vmul.f32 0.0, %v267_v42 }
 0x13a   :  { %v269_v43 = vpop.permute.xlu0 %268 }
 0x13b   :  { %v273_v45 = vmul.f32 %v269_v43, %v265_v41 }
 0x13d   :  { %v274_v46 = vadd.f32 %v273_v45, %v272_v44 }
 0x13f   :  { %1466 = vtanh.f32 %v274_v46 }
 0x145   :  { %v1467_v47 = vpop.eup %1466 }
 0x146   :  { %v276_v49 = vmul.f32 %v1467_v47, %v271_v48 }
 0x148   :  { %v277_v50 = vpack.c.bf16 %v276_v49, %v276_v49  ;;  %v146_v49 = vpop.f32.mrf.mxu0 }
 0x14a   :  { %278 = vst [vmem:[#allocation3] sm:$0xf] %v277_v50  ;;  %288 = vmatmul.bf16.vlgmr.msra.gmra.mxu2 %v277_v50  ;;  %v147_v50 = vadd.f32 %v146_v49, %v1735_v18  ;;  %v1816_v49 = vld [vmem:[%s2024_s2 + $0x70] sm:$0xff] }
 0x1cd   :  { %v289_v53 = vpop.f32.mrf.mxu2 }
 0x1ce   :  { %v290_v54 = vadd.f32 %v289_v53, %v142_v52 }
 0x1d0   :  { %v1286_v55 = vmul.f32 -1.442695, %v290_v54 }
 0x1d2   :  { %1468 = vpow2.f32 %v1286_v55 }
 0x1d5   :  { %v291_v56 = vpop.f32.mrf.mxu2 }
 0x1d8   :  { %v1469_v57 = vpop.eup %1468 }
 0x1d9   :  { %v296_v58 = vadd.f32 1.0, %v1469_v57 }
 0x1db   :  { %1470 = vrcp.f32 %v296_v58  ;;  %v308_v62 = vand.u32 2147483648, %v296_v58  ;;  %v306_v0 = vand.u32 2147483647, %v296_v58  ;;  %vm302_vm8 = vweird.f32 %v296_v58 }
 0x1dc   :  { %1472 = vtanh.f32 %v290_v54 }
 0x1dd   :  { %v309_v3 = vor.u32 1.1754944e-38, %v308_v62  ;;  %vm307_vm10 = vcmp.eq.f32.partialorder %v306_v0, 8.507059e+37 }
 0x1e1   :  { %v1471_v59 = vpop.eup %1470 }
 0x1e2   :  { %v298_v60 = vmul.f32 %v1471_v59, %v296_v58  ;;  %vm303_vm7 = vweird.f32 %v1471_v59  ;;  %v1473_v5 = vpop.eup %1472 }
 0x1e3   :  { %vm304_vm9 = vmor %vm302_vm8, %vm303_vm7 }
 0x1e4   :  { %v299_v61 = vsub.f32 1.0, %v298_v60 }
 0x1e6   :  { %v300_v63 = vmul.f32 %v1471_v59, %v299_v61 }
 0x1e8   :  { %v301_v1 = vadd.f32 %v1471_v59, %v300_v63 }
 0x1ea   :  { %v305_v4 = vsel %vm304_vm9, %v1471_v59, %v301_v1 }
 0x1eb   :  { %v310_v6 = vsel %vm307_vm10, %v309_v3, %v305_v4 }
 0x1ec   :  { %v313_v7 = vsel %vm1738_vm3, %v1473_v5, %v310_v6  ;;  %v1447_v6 = vld [vmem:[%s2023_s1 + $0x78] sm:$0xff] }
 0x1ed   :  { %316 = vrot.lane.b32.xlu2 %v313_v7, %s1591_s6  ;;  %314 = vrot.lane.b32.xlu1 %v313_v7, %s1590_s30 }
 0x1ee   :  { %716 = vmatpush.bf16.msra.mxu2 %v1447_v6 }
 0x1f5   :  { %318 = vrot.lane.b32.xlu2 %v313_v7, %s1589_s29 }
 0x247   :  { %v317_v9 = vpop.permute.xlu2 %316 }
 0x248   :  { %v321_v11 = vmul.f32 %v317_v9, %v313_v7  ;;  %v1446_v7 = vld [vmem:[%s2023_s1 + $0x70] sm:$0xff] }
 0x249   :  { %717 = vmatpush.bf16.msra.mxu2 %v1446_v7  ;;  %v1418_v9 = vld [vmem:[%s2025_s0 + $0x10] sm:$0xff] }
 0x24a   :  { %148 = vmatmul.bf16.gmra.mxu0 %v1418_v9 }
 0x24d   :  { %718 = vmatpush.bf16.msra.mxu2 %v1445_v8  ;;  %v1901_v8 = vld [vmem:[%s2026_s3 + $0x8] sm:$0xff] }
 0x24f   :  { %v319_v15 = vpop.permute.xlu2 %318 }
 0x25f   :  { %v315_v10 = vpop.permute.xlu1 %314 }
 0x260   :  { %v320_v12 = vmul.f32 %v315_v10, %v274_v46  ;;  %v1444_v10 = vld [vmem:[%s2023_s1 + $0x60] sm:$0xff] }
 0x261   :  { %719 = vmatpush.bf16.msra.mxu2 %v1444_v10 }
 0x262   :  { %v322_v13 = vadd.f32 %v321_v11, %v320_v12  ;;  %v1443_v11 = vld [vmem:[%s2023_s1 + $0x58] sm:$0xff]  ;;  %v1442_v12 = vld [vmem:[%s2023_s1 + $0x50] sm:$0xff] }
 0x264   :  { %1474 = vtanh.f32 %v322_v13 }
 0x265   :  { %720 = vmatpush.bf16.msra.mxu2 %v1443_v11 }
 0x269   :  { %721 = vmatpush.bf16.msra.mxu2 %v1442_v12 }
 0x26a   :  { %v1475_v14 = vpop.eup %1474 }
 0x26b   :  { %v324_v16 = vmul.f32 %v1475_v14, %v319_v15  ;;  %v1440_v14 = vld [vmem:[%s2023_s1 + $0x40] sm:$0xff] }
 0x26d   :  { %v325_v17 = vpack.c.bf16 %v324_v16, %v324_v16 }
 0x26f   :  { %326 = vst [vmem:[#allocation3 + $0x4] sm:$0xf] %v325_v17  ;;  %336 = vmatmul.bf16.vlgmr.msra.gmra.mxu3 %v325_v17 }
 0x2f2   :  { %v337_v21 = vpop.f32.mrf.mxu3 }
 0x2f3   :  { %v338_v22 = vadd.f32 %v337_v21, %v145_v20 }
 0x2f5   :  { %v1287_v23 = vmul.f32 -1.442695, %v338_v22 }
 0x2f7   :  { %1476 = vpow2.f32 %v1287_v23 }
 0x2fa   :  { %v339_v24 = vpop.f32.mrf.mxu3 }
 0x2fd   :  { %v1477_v25 = vpop.eup %1476 }
 0x2fe   :  { %v344_v26 = vadd.f32 1.0, %v1477_v25  ;;  %v1436_v25 = vld [vmem:[#allocation3] sm:$0xff] }
 0x300   :  { %1478 = vrcp.f32 %v344_v26  ;;  %v356_v30 = vand.u32 2147483648, %v344_v26  ;;  %v354_v32 = vand.u32 2147483647, %v344_v26  ;;  %vm350_vm12 = vweird.f32 %v344_v26 }
 0x301   :  { %1480 = vtanh.f32 %v338_v22 }
 0x302   :  { %v357_v34 = vor.u32 1.1754944e-38, %v356_v30  ;;  %vm355_vm14 = vcmp.eq.f32.partialorder %v354_v32, 8.507059e+37 }
 0x306   :  { %v1479_v27 = vpop.eup %1478 }
 0x307   :  { %v346_v28 = vmul.f32 %v1479_v27, %v344_v26  ;;  %vm351_vm11 = vweird.f32 %v1479_v27  ;;  %v1481_v37 = vpop.eup %1480 }
 0x308   :  { %vm352_vm13 = vmor %vm350_vm12, %vm351_vm11 }
 0x309   :  { %v347_v29 = vsub.f32 1.0, %v346_v28 }
 0x30b   :  { %v348_v31 = vmul.f32 %v1479_v27, %v347_v29 }
 0x30d   :  { %v349_v33 = vadd.f32 %v1479_v27, %v348_v31 }
 0x30f   :  { %v353_v36 = vsel %vm352_vm13, %v1479_v27, %v349_v33  ;;  %v149_v27 = vpop.f32.mrf.mxu0 }
 0x310   :  { %v358_v38 = vsel %vm355_vm14, %v357_v34, %v353_v36  ;;  %v150_v28 = vadd.f32 %v149_v27, %v1735_v18 }
 0x311   :  { %v361_v39 = vsel %vm1738_vm3, %v1481_v37, %v358_v38 }
 0x312   :  { %366 = vrot.lane.b32.xlu2 %v361_v39, %s1589_s29  ;;  %364 = vrot.lane.b32.xlu1 %v361_v39, %s1591_s6 }
 0x313   :  { %362 = vrot.lane.b32.xlu0 %v361_v39, %s1590_s30 }
 0x36c   :  { %v367_v46 = vpop.permute.xlu2 %366 }
 0x384   :  { %v365_v40 = vpop.permute.xlu1 %364 }
 0x385   :  { %v369_v41 = vmul.f32 %v365_v40, %v361_v39  ;;  %v363_v42 = vpop.permute.xlu0 %362 }
 0x386   :  { %v368_v43 = vmul.f32 %v363_v42, %v322_v13  ;;  %v1441_v13 = vld [vmem:[%s2023_s1 + $0x48] sm:$0xff] }
 0x387   :  { %722 = vmatpush.bf16.msra.mxu2 %v1441_v13 }
 0x388   :  { %v370_v44 = vadd.f32 %v369_v41, %v368_v43 }
 0x38a   :  { %1482 = vtanh.f32 %v370_v44 }
 0x38b   :  { %723 = vmatpush.bf16.msra.mxu2 %v1440_v14 }
 0x390   :  { %v1483_v45 = vpop.eup %1482 }
 0x391   :  { %v372_v47 = vmul.f32 %v1483_v45, %v367_v46 }
 0x393   :  { %v373_v48 = vpack.c.bf16 %v372_v47, %v372_v47 }
 0x395   :  { %374 = vst [vmem:[#allocation3 + $0x8] sm:$0xf] %v373_v48  ;;  %384 = vmatmul.bf16.vlgmr.msrb.gmra.mxu1 %v373_v48  ;;  %v1807_v48 = vld [vmem:[%s2024_s2 + $0x78] sm:$0xff] }
 0x396   :  { %819 = vmatpush.bf16.msra.mxu3 %v1807_v48  ;;  %866 = vmatpush.bf16.msra.mxu0 %v1807_v48 }
 0x397   :  { %913 = vmatpush.bf16.msrb.mxu1 %v1807_v48 }
 0x39a   :  { %820 = vmatpush.bf16.msra.mxu3 %v1816_v49  ;;  %867 = vmatpush.bf16.msra.mxu0 %v1816_v49 }
 0x39b   :  { %914 = vmatpush.bf16.msrb.mxu1 %v1816_v49 }
 0x412   :  { %v385_v51 = vpop.f32.mrf.mxu1 }
 0x413   :  { %v386_v52 = vadd.f32 %v385_v51, %v147_v50  ;;  %v1822_v50 = vld [vmem:[%s2024_s2 + $0x68] sm:$0xff]  ;;  %v1831_v51 = vld [vmem:[%s2024_s2 + $0x60] sm:$0xff] }
 0x414   :  { %821 = vmatpush.bf16.msra.mxu3 %v1822_v50  ;;  %868 = vmatpush.bf16.msra.mxu0 %v1822_v50 }
 0x415   :  { %v1288_v53 = vmul.f32 -1.442695, %v386_v52  ;;  %915 = vmatpush.bf16.msrb.mxu1 %v1822_v50 }
 0x417   :  { %1484 = vpow2.f32 %v1288_v53  ;;  %v1849_v53 = vld [vmem:[%s2024_s2 + $0x50] sm:$0xff] }
 0x418   :  { %822 = vmatpush.bf16.msra.mxu3 %v1831_v51  ;;  %869 = vmatpush.bf16.msra.mxu0 %v1831_v51 }
 0x419   :  { %916 = vmatpush.bf16.msrb.mxu1 %v1831_v51 }
 0x41a   :  { %v387_v54 = vpop.f32.mrf.mxu1 }
 0x41b   :  { %v1858_v54 = vld [vmem:[%s2024_s2 + $0x48] sm:$0xff] }
 0x41d   :  { %v1485_v55 = vpop.eup %1484 }
 0x41e   :  { %v392_v56 = vadd.f32 1.0, %v1485_v55  ;;  %v1867_v55 = vld [vmem:[%s2024_s2 + $0x40] sm:$0xff] }
 0x420   :  { %1486 = vrcp.f32 %v392_v56  ;;  %v404_v60 = vand.u32 2147483648, %v392_v56  ;;  %v402_v62 = vand.u32 2147483647, %v392_v56  ;;  %vm398_vm0 = vweird.f32 %v392_v56 }
 0x421   :  { %1488 = vtanh.f32 %v386_v52  ;;  %v1843_v52 = vld [vmem:[%s2024_s2 + $0x58] sm:$0xff] }
 0x422   :  { %v405_v0 = vor.u32 1.1754944e-38, %v404_v60  ;;  %vm403_vm2 = vcmp.eq.f32.partialorder %v402_v62, 8.507059e+37  ;;  %823 = vmatpush.bf16.msra.mxu3 %v1843_v52  ;;  %870 = vmatpush.bf16.msra.mxu0 %v1843_v52 }
 0x423   :  { %917 = vmatpush.bf16.msrb.mxu1 %v1843_v52 }
 0x426   :  { %v1487_v57 = vpop.eup %1486  ;;  %824 = vmatpush.bf16.msra.mxu3 %v1849_v53  ;;  %871 = vmatpush.bf16.msra.mxu0 %v1849_v53 }
 0x427   :  { %v394_v58 = vmul.f32 %v1487_v57, %v392_v56  ;;  %vm399_vm15 = vweird.f32 %v1487_v57  ;;  %v1489_v3 = vpop.eup %1488  ;;  %918 = vmatpush.bf16.msrb.mxu1 %v1849_v53 }
 0x428   :  { %vm400_vm1 = vmor %vm398_vm0, %vm399_vm15 }
 0x429   :  { %v395_v59 = vsub.f32 1.0, %v394_v58 }
 0x42a   :  { %825 = vmatpush.bf16.msra.mxu3 %v1858_v54  ;;  %872 = vmatpush.bf16.msra.mxu0 %v1858_v54 }
 0x42b   :  { %v396_v61 = vmul.f32 %v1487_v57, %v395_v59  ;;  %919 = vmatpush.bf16.msrb.mxu1 %v1858_v54 }
 0x42d   :  { %v397_v63 = vadd.f32 %v1487_v57, %v396_v61 }
 0x42e   :  { %826 = vmatpush.bf16.msra.mxu3 %v1867_v55  ;;  %873 = vmatpush.bf16.msra.mxu0 %v1867_v55 }
 0x42f   :  { %v401_v1 = vsel %vm400_vm1, %v1487_v57, %v397_v63  ;;  %920 = vmatpush.bf16.msrb.mxu1 %v1867_v55 }
 0x430   :  { %v406_v4 = vsel %vm403_vm2, %v405_v0, %v401_v1 }
 0x431   :  { %v409_v5 = vsel %vm1738_vm3, %v1489_v3, %v406_v4 }
 0x432   :  { %414 = vrot.lane.b32.xlu2 %v409_v5, %s1589_s29  ;;  %412 = vrot.lane.b32.xlu1 %v409_v5, %s1591_s6 }
 0x433   :  { %410 = vrot.lane.b32.xlu0 %v409_v5, %s1590_s30 }
 0x48c   :  { %v415_v22 = vpop.permute.xlu2 %414 }
 0x4a4   :  { %v413_v15 = vpop.permute.xlu1 %412 }
 0x4a5   :  { %v417_v16 = vmul.f32 %v413_v15, %v409_v5  ;;  %v411_v17 = vpop.permute.xlu0 %410 }
 0x4a6   :  { %v416_v19 = vmul.f32 %v411_v17, %v370_v44 }
 0x4a8   :  { %v1795_v20 = vadd.f32 %v417_v16, %v416_v19 }
 0x4aa   :  { %1490 = vtanh.f32 %v1795_v20 }
 0x4b0   :  { %v1491_v21 = vpop.eup %1490 }
 0x4b1   :  { %v420_v23 = vmul.f32 %v1491_v21, %v415_v22 }
 0x4b3   :  { %v421_v24 = vpack.c.bf16 %v420_v23, %v420_v23 }
 0x4b5   :  { %422 = vst [vmem:[#allocation3 + $0xc] sm:$0xf] %v421_v24  ;;  %432 = vmatmul.bf16.vlgmr.msrb.gmra.mxu2 %v421_v24 }
 0x4b6   :  { %1101 = vmatpush.bf16.msrb.mxu2 %v1807_v48 }
 0x4ba   :  { %1102 = vmatpush.bf16.msrb.mxu2 %v1816_v49 }
 0x4bc   :  { %v1437_v26 = vld [vmem:[#allocation3 + $0x8] sm:$0xff] }
 0x4be   :  { %1103 = vmatpush.bf16.msrb.mxu2 %v1822_v50 }
 0x4c2   :  { %1104 = vmatpush.bf16.msrb.mxu2 %v1831_v51 }
 0x4c5   :  { %724 = vmatmul.bf16.vlgmr.msra.gmra.mxu2 %v1436_v25 }
 0x4c6   :  { %1105 = vmatpush.bf16.msrb.mxu2 %v1843_v52 }
 0x4ca   :  { %1106 = vmatpush.bf16.msrb.mxu2 %v1849_v53 }
 0x4ce   :  { %1107 = vmatpush.bf16.msrb.mxu2 %v1858_v54 }
 0x4d2   :  { %1108 = vmatpush.bf16.msrb.mxu2 %v1867_v55 }
 0x4d5   :  { %729 = vmatmul.bf16.gmra.mxu2 %v1437_v26 }
 0x538   :  { %v433_v29 = vpop.f32.mrf.mxu2 }
 0x539   :  { %v434_v30 = vadd.f32 %v433_v29, %v150_v28 }
 0x53b   :  { %v1289_v31 = vmul.f32 -1.442695, %v434_v30 }
 0x53d   :  { %1492 = vpow2.f32 %v1289_v31 }
 0x540   :  { %v435_v32 = vpop.f32.mrf.mxu2 }
 0x543   :  { %v1493_v33 = vpop.eup %1492 }
 0x544   :  { %v440_v34 = vadd.f32 1.0, %v1493_v33 }
 0x546   :  { %1494 = vrcp.f32 %v440_v34  ;;  %v452_v39 = vand.u32 2147483648, %v440_v34  ;;  %v450_v41 = vand.u32 2147483647, %v440_v34  ;;  %vm446_vm5 = vweird.f32 %v440_v34 }
 0x547   :  { %1496 = vtanh.f32 %v434_v30 }
 0x548   :  { %v453_v43 = vor.u32 1.1754944e-38, %v452_v39  ;;  %vm451_vm7 = vcmp.eq.f32.partialorder %v450_v41, 8.507059e+37  ;;  %v725_v9 = vpop.f32.mrf.mxu2 }
 0x549   :  { %v726_v11 = vadd.f32 %v1901_v8, %v725_v9 }
 0x54c   :  { %v1495_v36 = vpop.eup %1494 }
 0x54d   :  { %v442_v37 = vmul.f32 %v1495_v36, %v440_v34  ;;  %vm447_vm4 = vweird.f32 %v1495_v36  ;;  %v1497_v45 = vpop.eup %1496 }
 0x54e   :  { %vm448_vm6 = vmor %vm446_vm5, %vm447_vm4 }
 0x54f   :  { %v443_v38 = vsub.f32 1.0, %v442_v37 }
 0x551   :  { %v444_v40 = vmul.f32 %v1495_v36, %v443_v38 }
 0x553   :  { %v445_v42 = vadd.f32 %v1495_v36, %v444_v40 }
 0x555   :  { %v449_v44 = vsel %vm448_vm6, %v1495_v36, %v445_v42 }
 0x556   :  { %v454_v46 = vsel %vm451_vm7, %v453_v43, %v449_v44  ;;  %v1419_v44 = vld [vmem:[%s2025_s0 + $0x18] sm:$0xff] }
 0x557   :  { %v457_v47 = vsel %vm1738_vm3, %v1497_v45, %v454_v46  ;;  %153 = vmatmul.bf16.gmra.mxu0 %v1419_v44 }
 0x558   :  { %462 = vrot.lane.b32.xlu2 %v457_v47, %s1589_s29  ;;  %460 = vrot.lane.b32.xlu1 %v457_v47, %s1591_s6 }
 0x559   :  { %458 = vrot.lane.b32.xlu0 %v457_v47, %s1590_s30 }
 0x5b2   :  { %v463_v62 = vpop.permute.xlu2 %462 }
 0x5ca   :  { %v461_v56 = vpop.permute.xlu1 %460 }
 0x5cb   :  { %v465_v57 = vmul.f32 %v461_v56, %v457_v47  ;;  %v459_v58 = vpop.permute.xlu0 %458 }
 0x5cc   :  { %v464_v59 = vmul.f32 %v459_v58, %v1795_v20 }
 0x5ce   :  { %v1877_v60 = vadd.f32 %v465_v57, %v464_v59 }
 0x5d0   :  { %1498 = vtanh.f32 %v1877_v60 }
 0x5d6   :  { %v1499_v61 = vpop.eup %1498 }
 0x5d7   :  { %v468_v63 = vmul.f32 %v1499_v61, %v463_v62 }
 0x5d9   :  { %v469_v0 = vpack.c.bf16 %v468_v63, %v468_v63 }
 0x5db   :  { %470 = vst [vmem:[#allocation3 + $0x10] sm:$0xf] %v469_v0  ;;  %480 = vmatmul.bf16.vlgmr.msrb.gmra.mxu3 %v469_v0 }
 0x5dc   :  { %960 = vmatpush.bf16.msrb.mxu3 %v1807_v48 }
 0x5e0   :  { %961 = vmatpush.bf16.msrb.mxu3 %v1816_v49 }
 0x5e4   :  { %962 = vmatpush.bf16.msrb.mxu3 %v1822_v50 }
 0x5e8   :  { %963 = vmatpush.bf16.msrb.mxu3 %v1831_v51 }
 0x5eb   :  { %827 = vmatmul.bf16.vlgmr.msra.gmra.mxu3 %v1588_v2  ;;  %v151_v2 = vpop.f32.mrf.mxu0 }
 0x5ec   :  { %964 = vmatpush.bf16.msrb.mxu3 %v1843_v52  ;;  %v152_v1 = vadd.f32 %v151_v2, %v1735_v18 }
 0x5f0   :  { %965 = vmatpush.bf16.msrb.mxu3 %v1849_v53 }
 0x5f3   :  { %v154_v9 = vpop.f32.mrf.mxu0 }
 0x5f4   :  { %966 = vmatpush.bf16.msrb.mxu3 %v1858_v54 }
 0x5f8   :  { %967 = vmatpush.bf16.msrb.mxu3 %v1867_v55 }
 0x5fc   :  { %1148 = vmatpush.bf16.msra.mxu3 %v1807_v48 }
 0x600   :  { %1149 = vmatpush.bf16.msra.mxu3 %v1816_v49 }
 0x604   :  { %1150 = vmatpush.bf16.msra.mxu3 %v1822_v50 }
 0x608   :  { %1151 = vmatpush.bf16.msra.mxu3 %v1831_v51 }
 0x60c   :  { %1152 = vmatpush.bf16.msra.mxu3 %v1843_v52 }
 0x610   :  { %1153 = vmatpush.bf16.msra.mxu3 %v1849_v53 }
 0x614   :  { %1154 = vmatpush.bf16.msra.mxu3 %v1858_v54 }
 0x618   :  { %1155 = vmatpush.bf16.msra.mxu3 %v1867_v55 }
 0x65e   :  { %v481_v3 = vpop.f32.mrf.mxu3 }
 0x65f   :  { %v482_v4 = vadd.f32 %v481_v3, %v152_v1 }
 0x661   :  { %v1290_v5 = vmul.f32 -1.442695, %v482_v4 }
 0x663   :  { %1500 = vpow2.f32 %v1290_v5 }
 0x666   :  { %v483_v6 = vpop.f32.mrf.mxu3 }
 0x669   :  { %v1501_v7 = vpop.eup %1500 }
 0x66a   :  { %v488_v10 = vadd.f32 1.0, %v1501_v7 }
 0x66c   :  { %1502 = vrcp.f32 %v488_v10  ;;  %v500_v20 = vand.u32 2147483648, %v488_v10  ;;  %v498_v22 = vand.u32 2147483647, %v488_v10  ;;  %vm494_vm9 = vweird.f32 %v488_v10 }
 0x66e   :  { %v828_v12 = vpop.f32.mrf.mxu3  ;;  %v501_v26 = vor.u32 1.1754944e-38, %v500_v20  ;;  %vm499_vm11 = vcmp.eq.f32.partialorder %v498_v22, 8.507059e+37 }
 0x66f   :  { %v829_v13 = vadd.f32 %v828_v12, %v726_v11  ;;  %v155_v11 = vadd.f32 %v154_v9, %v1735_v18 }
 0x671   :  { %v1406_v14 = vmul.f32 -1.442695, %v829_v13 }
 0x672   :  { %v1503_v15 = vpop.eup %1502 }
 0x673   :  { %1504 = vpow2.f32 %v1406_v14  ;;  %v490_v16 = vmul.f32 %v1503_v15, %v488_v10  ;;  %vm495_vm8 = vweird.f32 %v1503_v15  ;;  %v1932_v10 = vpop.f32.mrf.mxu0 }
 0x674   :  { %1506 = vtanh.f32 %v482_v4  ;;  %vm496_vm10 = vmor %vm494_vm9, %vm495_vm8 }
 0x675   :  { %v491_v17 = vsub.f32 1.0, %v490_v16 }
 0x676   :  { %v830_v19 = vpop.f32.mrf.mxu3 }
 0x677   :  { %v492_v21 = vmul.f32 %v1503_v15, %v491_v17  ;;  %v727_v17 = vpop.f32.mrf.mxu2 }
 0x678   :  { %v728_v20 = vadd.f32 %v1901_v8, %v727_v17 }
 0x679   :  { %v1505_v23 = vpop.eup %1504  ;;  %v493_v24 = vadd.f32 %v1503_v15, %v492_v21 }
 0x67a   :  { %v835_v25 = vadd.f32 1.0, %v1505_v23  ;;  %v1507_v28 = vpop.eup %1506 }
 0x67b   :  { %v497_v27 = vsel %vm496_vm10, %v1503_v15, %v493_v24 }
 0x67c   :  { %1508 = vrcp.f32 %v835_v25  ;;  %v502_v29 = vsel %vm499_vm11, %v501_v26, %v497_v27  ;;  %v847_v34 = vand.u32 2147483648, %v835_v25  ;;  %v845_v37 = vand.u32 2147483647, %v835_v25 }
 0x67d   :  { %v505_v30 = vsel %vm1738_vm3, %v1507_v28, %v502_v29  ;;  %1510 = vtanh.f32 %v829_v13  ;;  %vm841_vm13 = vweird.f32 %v835_v25 }
 0x67e   :  { %510 = vrot.lane.b32.xlu2 %v505_v30, %s1589_s29  ;;  %508 = vrot.lane.b32.xlu1 %v505_v30, %s1591_s6  ;;  %v848_v39 = vor.u32 1.1754944e-38, %v847_v34  ;;  %vm846_vm15 = vcmp.eq.f32.partialorder %v845_v37, 8.507059e+37 }
 0x67f   :  { %506 = vrot.lane.b32.xlu0 %v505_v30, %s1590_s30  ;;  %v730_v17 = vpop.f32.mrf.mxu2 }
 0x682   :  { %v1509_v31 = vpop.eup %1508 }
 0x683   :  { %v837_v32 = vmul.f32 %v1509_v31, %v835_v25  ;;  %vm842_vm12 = vweird.f32 %v1509_v31  ;;  %v1511_v41 = vpop.eup %1510 }
 0x684   :  { %vm843_vm14 = vmor %vm841_vm13, %vm842_vm12 }
 0x685   :  { %v838_v33 = vsub.f32 1.0, %v837_v32 }
 0x687   :  { %v839_v36 = vmul.f32 %v1509_v31, %v838_v33 }
 0x689   :  { %v840_v38 = vadd.f32 %v1509_v31, %v839_v36 }
 0x68b   :  { %v844_v40 = vsel %vm843_vm14, %v1509_v31, %v840_v38 }
 0x68c   :  { %v849_v42 = vsel %vm846_vm15, %v848_v39, %v844_v40 }
 0x68d   :  { %v852_v43 = vsel %vm1738_vm3, %v1511_v41, %v849_v42 }
 0x68e   :  { %857 = vrot.lane.b32.xlu2 %v852_v43, %s1589_s29  ;;  %855 = vrot.lane.b32.xlu1 %v852_v43, %s1591_s6 }
 0x68f   :  { %853 = vrot.lane.b32.xlu0 %v852_v43, %s1590_s30 }
 0x6d8   :  { %v511_v59 = vpop.permute.xlu2 %510 }
 0x6e8   :  { %v858_v5 = vpop.permute.xlu2 %857 }
 0x6f0   :  { %v509_v45 = vpop.permute.xlu1 %508 }
 0x6f1   :  { %v513_v46 = vmul.f32 %v509_v45, %v505_v30  ;;  %v507_v47 = vpop.permute.xlu0 %506 }
 0x6f2   :  { %v512_v56 = vmul.f32 %v507_v47, %v1877_v60 }
 0x6f4   :  { %v1918_v57 = vadd.f32 %v513_v46, %v512_v56 }
 0x6f6   :  { %1512 = vtanh.f32 %v1918_v57 }
 0x6fc   :  { %v1513_v58 = vpop.eup %1512 }
 0x6fd   :  { %v516_v61 = vmul.f32 %v1513_v58, %v511_v59 }
 0x6ff   :  { %v517_v62 = vpack.c.bf16 %v516_v61, %v516_v61 }
 0x700   :  { %v856_v63 = vpop.permute.xlu1 %855 }
 0x701   :  { %518 = vst [vmem:[#allocation3 + $0x14] sm:$0xf] %v517_v62  ;;  %528 = vmatmul.bf16.vlgmr.msrb.gmra.mxu0 %v517_v62  ;;  %v860_v0 = vmul.f32 %v856_v63, %v852_v43  ;;  %v854_v2 = vpop.permute.xlu0 %853 }
 0x702   :  { %v859_v1 = vmul.f32 0.0, %v854_v2  ;;  %1007 = vmatpush.bf16.msrb.mxu0 %v1807_v48 }
 0x704   :  { %v1922_v3 = vadd.f32 %v860_v0, %v859_v1 }
 0x706   :  { %1514 = vtanh.f32 %v1922_v3  ;;  %1008 = vmatpush.bf16.msrb.mxu0 %v1816_v49 }
 0x708   :  { %v1438_v60 = vld [vmem:[#allocation3 + $0x10] sm:$0xff] }
 0x709   :  { %734 = vmatmul.bf16.gmra.mxu2 %v1438_v60 }
 0x70a   :  { %1009 = vmatpush.bf16.msrb.mxu0 %v1822_v50 }
 0x70c   :  { %v1515_v4 = vpop.eup %1514 }
 0x70d   :  { %v863_v6 = vmul.f32 %v1515_v4, %v858_v5 }
 0x70e   :  { %1010 = vmatpush.bf16.msrb.mxu0 %v1831_v51 }
 0x70f   :  { %v864_v7 = vpack.c.bf16 %v863_v6, %v863_v6 }
 0x711   :  { %874 = vmatmul.bf16.vlgmr.msra.gmra.mxu0 %v864_v7 }
 0x712   :  { %1011 = vmatpush.bf16.msrb.mxu0 %v1843_v52 }
 0x716   :  { %1012 = vmatpush.bf16.msrb.mxu0 %v1849_v53 }
 0x71a   :  { %1013 = vmatpush.bf16.msrb.mxu0 %v1858_v54 }
 0x71e   :  { %1014 = vmatpush.bf16.msrb.mxu0 %v1867_v55 }
 0x77e   :  { %v529_v12 = vpop.f32.mrf.mxu0 }
 0x77f   :  { %v530_v13 = vadd.f32 %v529_v12, %v155_v11 }
 0x781   :  { %v1291_v14 = vmul.f32 -1.442695, %v530_v13 }
 0x783   :  { %1516 = vpow2.f32 %v1291_v14 }
 0x786   :  { %v531_v15 = vpop.f32.mrf.mxu0 }
 0x789   :  { %v1517_v16 = vpop.eup %1516 }
 0x78a   :  { %v536_v19 = vadd.f32 1.0, %v1517_v16 }
 0x78c   :  { %1518 = vrcp.f32 %v536_v19  ;;  %v548_v28 = vand.u32 2147483648, %v536_v19  ;;  %v546_v30 = vand.u32 2147483647, %v536_v19  ;;  %vm542_vm1 = vweird.f32 %v536_v19 }
 0x78e   :  { %v875_v21 = vpop.f32.mrf.mxu0  ;;  %v549_v34 = vor.u32 1.1754944e-38, %v548_v28  ;;  %vm547_vm4 = vcmp.eq.f32.partialorder %v546_v30, 8.507059e+37 }
 0x78f   :  { %v876_v22 = vadd.f32 %v875_v21, %v728_v20 }
 0x791   :  { %v1407_v23 = vmul.f32 -1.442695, %v876_v22 }
 0x792   :  { %v1519_v24 = vpop.eup %1518 }
 0x793   :  { %1520 = vpow2.f32 %v1407_v23  ;;  %v538_v25 = vmul.f32 %v1519_v24, %v536_v19  ;;  %vm543_vm0 = vweird.f32 %v1519_v24 }
 0x794   :  { %1522 = vtanh.f32 %v530_v13  ;;  %vm544_vm2 = vmor %vm542_vm1, %vm543_vm0 }
 0x795   :  { %v539_v26 = vsub.f32 1.0, %v538_v25 }
 0x796   :  { %v877_v27 = vpop.f32.mrf.mxu0 }
 0x797   :  { %v540_v29 = vmul.f32 %v1519_v24, %v539_v26 }
 0x799   :  { %v1521_v31 = vpop.eup %1520  ;;  %v541_v32 = vadd.f32 %v1519_v24, %v540_v29 }
 0x79a   :  { %v882_v33 = vadd.f32 1.0, %v1521_v31  ;;  %v1523_v37 = vpop.eup %1522 }
 0x79b   :  { %v545_v36 = vsel %vm544_vm2, %v1519_v24, %v541_v32 }
 0x79c   :  { %1524 = vrcp.f32 %v882_v33  ;;  %v550_v38 = vsel %vm547_vm4, %v549_v34, %v545_v36  ;;  %v894_v43 = vand.u32 2147483648, %v882_v33  ;;  %v892_v45 = vand.u32 2147483647, %v882_v33 }
 0x79d   :  { %v553_v39 = vsel %vm1738_vm3, %v1523_v37, %v550_v38  ;;  %1526 = vtanh.f32 %v876_v22  ;;  %vm888_vm6 = vweird.f32 %v882_v33 }
 0x79e   :  { %558 = vrot.lane.b32.xlu2 %v553_v39, %s1589_s29  ;;  %556 = vrot.lane.b32.xlu1 %v553_v39, %s1591_s6  ;;  %v895_v47 = vor.u32 1.1754944e-38, %v894_v43  ;;  %vm893_vm8 = vcmp.eq.f32.partialorder %v892_v45, 8.507059e+37 }
 0x79f   :  { %554 = vrot.lane.b32.xlu0 %v553_v39, %s1590_s30 }
 0x7a2   :  { %v1525_v40 = vpop.eup %1524 }
 0x7a3   :  { %v884_v41 = vmul.f32 %v1525_v40, %v882_v33  ;;  %vm889_vm5 = vweird.f32 %v1525_v40  ;;  %v1527_v58 = vpop.eup %1526 }
 0x7a4   :  { %vm890_vm7 = vmor %vm888_vm6, %vm889_vm5 }
 0x7a5   :  { %v885_v42 = vsub.f32 1.0, %v884_v41  ;;  %v732_v41 = vpop.f32.mrf.mxu2 }
 0x7a7   :  { %v886_v44 = vmul.f32 %v1525_v40, %v885_v42  ;;  %v733_v42 = vadd.f32 %v1901_v8, %v732_v41 }
 0x7a9   :  { %v887_v46 = vadd.f32 %v1525_v40, %v886_v44 }
 0x7ab   :  { %v891_v56 = vsel %vm890_vm7, %v1525_v40, %v887_v46 }
 0x7ac   :  { %v896_v59 = vsel %vm893_vm8, %v895_v47, %v891_v56 }
 0x7ad   :  { %v899_v61 = vsel %vm1738_vm3, %v1527_v58, %v896_v59 }
 0x7ae   :  { %904 = vrot.lane.b32.xlu2 %v899_v61, %s1589_s29  ;;  %902 = vrot.lane.b32.xlu1 %v899_v61, %s1591_s6 }
 0x7af   :  { %900 = vrot.lane.b32.xlu0 %v899_v61, %s1590_s30 }
 0x7f8   :  { %v559_v4 = vpop.permute.xlu2 %558 }
 0x808   :  { %v905_v14 = vpop.permute.xlu2 %904 }
 0x810   :  { %v557_v62 = vpop.permute.xlu1 %556 }
 0x811   :  { %v561_v63 = vmul.f32 %v557_v62, %v553_v39  ;;  %v555_v0 = vpop.permute.xlu0 %554 }
 0x812   :  { %v560_v2 = vmul.f32 %v555_v0, %v1918_v57 }
 0x814   :  { %v1947_v1 = vadd.f32 %v561_v63, %v560_v2 }
 0x816   :  { %1528 = vtanh.f32 %v1947_v1 }
 0x81c   :  { %v1529_v60 = vpop.eup %1528 }
 0x81d   :  { %v564_v5 = vmul.f32 %v1529_v60, %v559_v4 }
 0x81f   :  { %v565_v6 = vpack.c.bf16 %v564_v5, %v564_v5 }
 0x820   :  { %v903_v7 = vpop.permute.xlu1 %902 }
 0x821   :  { %v907_v9 = vmul.f32 %v903_v7, %v899_v61  ;;  %566 = vst [vmem:[#allocation3 + $0x18] sm:$0xf] %v565_v6  ;;  %576 = vmatmul.bf16.vlgmr.msra.gmra.mxu1 %v565_v6  ;;  %v901_v11 = vpop.permute.xlu0 %900 }
 0x822   :  { %v906_v12 = vmul.f32 %v901_v11, %v1922_v3  ;;  %1054 = vmatpush.bf16.msra.mxu1 %v1807_v48  ;;  %v157_v48 = vadd.f32 %v1932_v10, %v1735_v18 }
 0x824   :  { %v908_v13 = vadd.f32 %v907_v9, %v906_v12 }
 0x826   :  { %1530 = vtanh.f32 %v908_v13  ;;  %1055 = vmatpush.bf16.msra.mxu1 %v1816_v49 }
 0x82a   :  { %1056 = vmatpush.bf16.msra.mxu1 %v1822_v50 }
 0x82c   :  { %v1531_v57 = vpop.eup %1530 }
 0x82d   :  { %v910_v15 = vmul.f32 %v1531_v57, %v905_v14 }
 0x82e   :  { %1057 = vmatpush.bf16.msra.mxu1 %v1831_v51  ;;  %v731_v51 = vadd.f32 %v1901_v8, %v730_v17 }
 0x82f   :  { %v911_v16 = vpack.c.bf16 %v910_v15, %v910_v15 }
 0x831   :  { %921 = vmatmul.bf16.vlgmr.msrb.gmra.mxu1 %v911_v16 }
 0x832   :  { %1058 = vmatpush.bf16.msra.mxu1 %v1843_v52 }
 0x836   :  { %1059 = vmatpush.bf16.msra.mxu1 %v1849_v53 }
 0x83a   :  { %1060 = vmatpush.bf16.msra.mxu1 %v1858_v54 }
 0x83e   :  { %1061 = vmatpush.bf16.msra.mxu1 %v1867_v55 }
 0x89e   :  { %v577_v49 = vpop.f32.mrf.mxu1 }
 0x89f   :  { %v1961_v50 = vadd.f32 %v577_v49, %v157_v48 }
 0x8a1   :  { %v1292_v49 = vmul.f32 -1.442695, %v1961_v50 }
 0x8a6   :  { %v579_v3 = vpop.f32.mrf.mxu1 }
 0x8a7   :  { %v735_v3 = vpop.f32.mrf.mxu2 }
 0x8a8   :  { %v736_v17 = vadd.f32 %v1901_v8, %v735_v3 }
 0x8ae   :  { %v922_v19 = vpop.f32.mrf.mxu1 }
 0x8af   :  { %v923_v20 = vadd.f32 %v922_v19, %v731_v51 }
 0x8b1   :  { %v1408_v21 = vmul.f32 -1.442695, %v923_v20 }
 0x8b3   :  { %1532 = vpow2.f32 %v1408_v21 }
 0x8b6   :  { %v924_v52 = vpop.f32.mrf.mxu1 }
 0x8b9   :  { %v1533_v53 = vpop.eup %1532 }
 0x8ba   :  { %v929_v22 = vadd.f32 1.0, %v1533_v53 }
 0x8bc   :  { %1534 = vrcp.f32 %v929_v22  ;;  %v941_v18 = vand.u32 2147483648, %v929_v22  ;;  %v939_v24 = vand.u32 2147483647, %v929_v22  ;;  %vm935_vm10 = vweird.f32 %v929_v22 }
 0x8bd   :  { %1536 = vtanh.f32 %v923_v20 }
 0x8be   :  { %v942_v26 = vor.u32 1.1754944e-38, %v941_v18  ;;  %vm940_vm12 = vcmp.eq.f32.partialorder %v939_v24, 8.507059e+37 }
 0x8c2   :  { %v1535_v54 = vpop.eup %1534 }
 0x8c3   :  { %v931_v55 = vmul.f32 %v1535_v54, %v929_v22  ;;  %vm936_vm9 = vweird.f32 %v1535_v54  ;;  %v1537_v28 = vpop.eup %1536 }
 0x8c4   :  { %vm937_vm11 = vmor %vm935_vm10, %vm936_vm9 }
 0x8c5   :  { %v932_v23 = vsub.f32 1.0, %v931_v55 }
 0x8c7   :  { %v933_v10 = vmul.f32 %v1535_v54, %v932_v23 }
 0x8c9   :  { %v934_v25 = vadd.f32 %v1535_v54, %v933_v10 }
 0x8cb   :  { %v938_v27 = vsel %vm937_vm11, %v1535_v54, %v934_v25 }
 0x8cc   :  { %v943_v29 = vsel %vm940_vm12, %v942_v26, %v938_v27 }
 0x8cd   :  { %v946_v30 = vsel %vm1738_vm3, %v1537_v28, %v943_v29 }
 0x8ce   :  { %951 = vrot.lane.b32.xlu2 %v946_v30, %s1589_s29  ;;  %949 = vrot.lane.b32.xlu1 %v946_v30, %s1591_s6 }
 0x8cf   :  { %947 = vrot.lane.b32.xlu0 %v946_v30, %s1590_s30 }
 0x928   :  { %v952_v38 = vpop.permute.xlu2 %951 }
 0x940   :  { %v950_v31 = vpop.permute.xlu1 %949 }
 0x941   :  { %v954_v32 = vmul.f32 %v950_v31, %v946_v30  ;;  %v948_v33 = vpop.permute.xlu0 %947 }
 0x942   :  { %v953_v34 = vmul.f32 %v948_v33, %v908_v13 }
 0x944   :  { %v955_v36 = vadd.f32 %v954_v32, %v953_v34 }
 0x946   :  { %1538 = vtanh.f32 %v955_v36 }
 0x94c   :  { %v1539_v37 = vpop.eup %1538 }
 0x94d   :  { %v957_v39 = vmul.f32 %v1539_v37, %v952_v38 }
 0x94f   :  { %v958_v40 = vpack.c.bf16 %v957_v39, %v957_v39 }
 0x951   :  { %968 = vmatmul.bf16.vlgmr.msrb.gmra.mxu3 %v958_v40 }
 0x9d4   :  { %v969_v43 = vpop.f32.mrf.mxu3 }
 0x9d5   :  { %v970_v44 = vadd.f32 %v969_v43, %v733_v42 }
 0x9d7   :  { %v1409_v45 = vmul.f32 -1.442695, %v970_v44 }
 0x9d9   :  { %1540 = vpow2.f32 %v1409_v45 }
 0x9dc   :  { %v971_v46 = vpop.f32.mrf.mxu3 }
 0x9df   :  { %v1541_v47 = vpop.eup %1540 }
 0x9e0   :  { %v976_v56 = vadd.f32 1.0, %v1541_v47 }
 0x9e2   :  { %1542 = vrcp.f32 %v976_v56  ;;  %v988_v62 = vand.u32 2147483648, %v976_v56  ;;  %v986_v0 = vand.u32 2147483647, %v976_v56  ;;  %vm982_vm14 = vweird.f32 %v976_v56 }
 0x9e3   :  { %1544 = vtanh.f32 %v970_v44 }
 0x9e4   :  { %v989_v60 = vor.u32 1.1754944e-38, %v988_v62  ;;  %vm987_vm0 = vcmp.eq.f32.partialorder %v986_v0, 8.507059e+37 }
 0x9e8   :  { %v1543_v58 = vpop.eup %1542 }
 0x9e9   :  { %v978_v59 = vmul.f32 %v1543_v58, %v976_v56  ;;  %vm983_vm13 = vweird.f32 %v1543_v58  ;;  %v1545_v5 = vpop.eup %1544 }
 0x9ea   :  { %vm984_vm15 = vmor %vm982_vm14, %vm983_vm13 }
 0x9eb   :  { %v979_v61 = vsub.f32 1.0, %v978_v59 }
 0x9ed   :  { %v980_v63 = vmul.f32 %v1543_v58, %v979_v61 }
 0x9ef   :  { %v981_v2 = vadd.f32 %v1543_v58, %v980_v63 }
 0x9f1   :  { %v985_v4 = vsel %vm984_vm15, %v1543_v58, %v981_v2 }
 0x9f2   :  { %v990_v6 = vsel %vm987_vm0, %v989_v60, %v985_v4 }
 0x9f3   :  { %v993_v7 = vsel %vm1738_vm3, %v1545_v5, %v990_v6 }
 0x9f4   :  { %998 = vrot.lane.b32.xlu2 %v993_v7, %s1589_s29  ;;  %996 = vrot.lane.b32.xlu1 %v993_v7, %s1591_s6 }
 0x9f5   :  { %994 = vrot.lane.b32.xlu0 %v993_v7, %s1590_s30 }
 0xa4e   :  { %v999_v15 = vpop.permute.xlu2 %998 }
 0xa66   :  { %v997_v9 = vpop.permute.xlu1 %996 }
 0xa67   :  { %v1001_v11 = vmul.f32 %v997_v9, %v993_v7  ;;  %v995_v12 = vpop.permute.xlu0 %994 }
 0xa68   :  { %v1000_v13 = vmul.f32 %v995_v12, %v955_v36 }
 0xa6a   :  { %v1975_v57 = vadd.f32 %v1001_v11, %v1000_v13  ;;  %v737_v11 = vpop.f32.mrf.mxu2 }
 0xa6b   :  { %v738_v12 = vadd.f32 %v1901_v8, %v737_v11 }
 0xa6c   :  { %1546 = vtanh.f32 %v1975_v57 }
 0xa6d   :  { %1548 = vpow2.f32 %v1292_v49 }
 0xa72   :  { %v1547_v14 = vpop.eup %1546 }
 0xa73   :  { %v1004_v16 = vmul.f32 %v1547_v14, %v999_v15  ;;  %v1549_v19 = vpop.eup %1548 }
 0xa74   :  { %v584_v52 = vadd.f32 1.0, %v1549_v19 }
 0xa75   :  { %v1005_v48 = vpack.c.bf16 %v1004_v16, %v1004_v16 }
 0xa76   :  { %v596_v37 = vand.u32 2147483648, %v584_v52  ;;  %vm590_vm7 = vweird.f32 %v584_v52  ;;  %v594_v39 = vand.u32 2147483647, %v584_v52 }
 0xa77   :  { %1015 = vmatmul.bf16.vlgmr.msrb.gmra.mxu0 %v1005_v48 }
 0xa78   :  { %v597_v41 = vor.u32 1.1754944e-38, %v596_v37  ;;  %vm595_vm9 = vcmp.eq.f32.partialorder %v594_v39, 8.507059e+37 }
 0xaf4   :  { %v1016_v51 = vpop.f32.mrf.mxu0 }
 0xaf5   :  { %v1017_v20 = vadd.f32 %v1016_v51, %v736_v17 }
 0xaf7   :  { %v1410_v21 = vmul.f32 -1.442695, %v1017_v20 }
 0xaf9   :  { %1550 = vpow2.f32 %v1410_v21 }
 0xafa   :  { %1552 = vrcp.f32 %v584_v52 }
 0xafc   :  { %v1018_v53 = vpop.f32.mrf.mxu0 }
 0xaff   :  { %v1551_v22 = vpop.eup %1550 }
 0xb00   :  { %v1023_v54 = vadd.f32 1.0, %v1551_v22  ;;  %v1553_v55 = vpop.eup %1552 }
 0xb01   :  { %v586_v23 = vmul.f32 %v1553_v55, %v584_v52  ;;  %vm591_vm6 = vweird.f32 %v1553_v55 }
 0xb02   :  { %1554 = vrcp.f32 %v1023_v54  ;;  %v1035_v26 = vand.u32 2147483648, %v1023_v54  ;;  %v1033_v28 = vand.u32 2147483647, %v1023_v54  ;;  %vm1029_vm2 = vweird.f32 %v1023_v54  ;;  %vm592_vm8 = vmor %vm590_vm7, %vm591_vm6 }
 0xb03   :  { %v587_v24 = vsub.f32 1.0, %v586_v23  ;;  %1556 = vtanh.f32 %v1017_v20 }
 0xb04   :  { %v1036_v31 = vor.u32 1.1754944e-38, %v1035_v26  ;;  %vm1034_vm5 = vcmp.eq.f32.partialorder %v1033_v28, 8.507059e+37  ;;  %1558 = vtanh.f32 %v1961_v50 }
 0xb05   :  { %v588_v29 = vmul.f32 %v1553_v55, %v587_v24 }
 0xb07   :  { %v589_v33 = vadd.f32 %v1553_v55, %v588_v29 }
 0xb08   :  { %v1555_v18 = vpop.eup %1554 }
 0xb09   :  { %v1025_v10 = vmul.f32 %v1555_v18, %v1023_v54  ;;  %vm1030_vm1 = vweird.f32 %v1555_v18  ;;  %v1557_v34 = vpop.eup %1556  ;;  %v593_v40 = vsel %vm592_vm8, %v1553_v55, %v589_v33 }
 0xb0a   :  { %vm1031_vm4 = vmor %vm1029_vm2, %vm1030_vm1  ;;  %v598_v42 = vsel %vm595_vm9, %v597_v41, %v593_v40  ;;  %v1559_v43 = vpop.eup %1558 }
 0xb0b   :  { %v1026_v25 = vsub.f32 1.0, %v1025_v10  ;;  %v601_v44 = vsel %vm1738_vm3, %v1559_v43, %v598_v42 }
 0xb0d   :  { %v1027_v27 = vmul.f32 %v1555_v18, %v1026_v25 }
 0xb0f   :  { %v1028_v30 = vadd.f32 %v1555_v18, %v1027_v27 }
 0xb11   :  { %v1032_v32 = vsel %vm1031_vm4, %v1555_v18, %v1028_v30 }
 0xb12   :  { %v1037_v36 = vsel %vm1034_vm5, %v1036_v31, %v1032_v32 }
 0xb13   :  { %v1040_v38 = vsel %vm1738_vm3, %v1557_v34, %v1037_v36 }
 0xb14   :  { %1045 = vrot.lane.b32.xlu2 %v1040_v38, %s1589_s29  ;;  %1043 = vrot.lane.b32.xlu1 %v1040_v38, %s1591_s6 }
 0xb15   :  { %1041 = vrot.lane.b32.xlu0 %v1040_v38, %s1590_s30 }
 0xb1c   :  { %606 = vrot.lane.b32.xlu2 %v601_v44, %s1589_s29  ;;  %604 = vrot.lane.b32.xlu1 %v601_v44, %s1591_s6 }
 0xb1d   :  { %602 = vrot.lane.b32.xlu0 %v601_v44, %s1590_s30 }
 0xb6e   :  { %v1046_v62 = vpop.permute.xlu2 %1045 }
 0xb76   :  { %v607_v6 = vpop.permute.xlu2 %606 }
 0xb86   :  { %v1044_v50 = vpop.permute.xlu1 %1043 }
 0xb87   :  { %v1048_v45 = vmul.f32 %v1044_v50, %v1040_v38  ;;  %v1042_v46 = vpop.permute.xlu0 %1041 }
 0xb88   :  { %v1047_v47 = vmul.f32 %v1042_v46, %v1975_v57 }
 0xb8a   :  { %v1049_v56 = vadd.f32 %v1048_v45, %v1047_v47 }
 0xb8c   :  { %1560 = vtanh.f32 %v1049_v56 }
 0xb8e   :  { %v605_v58 = vpop.permute.xlu1 %604 }
 0xb8f   :  { %v609_v59 = vmul.f32 %v605_v58, %v601_v44  ;;  %v603_v61 = vpop.permute.xlu0 %602 }
 0xb90   :  { %v608_v63 = vmul.f32 %v603_v61, %v1947_v1 }
 0xb92   :  { %v1561_v0 = vpop.eup %1560  ;;  %v610_v2 = vadd.f32 %v609_v59, %v608_v63 }
 0xb93   :  { %v1051_v60 = vmul.f32 %v1561_v0, %v1046_v62 }
 0xb94   :  { %1562 = vtanh.f32 %v610_v2  ;;  %616 = vst [vmem:[%s2027_s5] sm:$0xff] %v610_v2 }
 0xb95   :  { %v1052_v4 = vpack.c.bf16 %v1051_v60, %v1051_v60 }
 0xb97   :  { %1062 = vmatmul.bf16.vlgmr.msra.gmra.mxu1 %v1052_v4 }
 0xb9a   :  { %v1563_v5 = vpop.eup %1562 }
 0xb9b   :  { %v612_v7 = vmul.f32 %v1563_v5, %v607_v6 }
 0xb9d   :  { %v613_v9 = vpack.c.bf16 %v612_v7, %v612_v7  ;;  %615 = vst [vmem:[%s2028_s4] sm:$0xff] %v612_v7 }
 0xb9f   :  { %614 = vst [vmem:[#allocation3 + $0x1c] sm:$0xf] %v613_v9 }
 0xba6   :  { %v1439_v1 = vld [vmem:[#allocation3 + $0x18] sm:$0xff] }
 0xba7   :  { %739 = vmatmul.bf16.gmra.mxu2 %v1439_v1 }
 0xc14   :  { %v1063_v13 = vpop.f32.mrf.mxu1 }
 0xc15   :  { %v1064_v57 = vadd.f32 %v1063_v13, %v738_v12 }
 0xc17   :  { %v1411_v14 = vmul.f32 -1.442695, %v1064_v57 }
 0xc19   :  { %1564 = vpow2.f32 %v1411_v14 }
 0xc1c   :  { %v1065_v15 = vpop.f32.mrf.mxu1 }
 0xc1f   :  { %v1565_v16 = vpop.eup %1564 }
 0xc20   :  { %v1070_v48 = vadd.f32 1.0, %v1565_v16 }
 0xc22   :  { %1566 = vrcp.f32 %v1070_v48  ;;  %v1082_v51 = vand.u32 2147483648, %v1070_v48  ;;  %v1080_v20 = vand.u32 2147483647, %v1070_v48  ;;  %vm1076_vm11 = vweird.f32 %v1070_v48 }
 0xc23   :  { %1568 = vtanh.f32 %v1064_v57 }
 0xc24   :  { %v1083_v52 = vor.u32 1.1754944e-38, %v1082_v51  ;;  %vm1081_vm13 = vcmp.eq.f32.partialorder %v1080_v20, 8.507059e+37 }
 0xc28   :  { %v1567_v49 = vpop.eup %1566 }
 0xc29   :  { %v1072_v3 = vmul.f32 %v1567_v49, %v1070_v48  ;;  %vm1077_vm10 = vweird.f32 %v1567_v49  ;;  %v1569_v22 = vpop.eup %1568 }
 0xc2a   :  { %vm1078_vm12 = vmor %vm1076_vm11, %vm1077_vm10  ;;  %v740_v30 = vpop.f32.mrf.mxu2 }
 0xc2b   :  { %v1073_v17 = vsub.f32 1.0, %v1072_v3  ;;  %v741_v32 = vadd.f32 %v1901_v8, %v740_v30 }
 0xc2d   :  { %v1074_v19 = vmul.f32 %v1567_v49, %v1073_v17 }
 0xc2f   :  { %v1075_v21 = vadd.f32 %v1567_v49, %v1074_v19 }
 0xc31   :  { %v1079_v53 = vsel %vm1078_vm12, %v1567_v49, %v1075_v21 }
 0xc32   :  { %v1084_v54 = vsel %vm1081_vm13, %v1083_v52, %v1079_v53  ;;  %v742_v31 = vpop.f32.mrf.mxu2 }
 0xc33   :  { %v1087_v55 = vsel %vm1738_vm3, %v1569_v22, %v1084_v54  ;;  %v743_v7 = vadd.f32 %v1901_v8, %v742_v31 }
 0xc34   :  { %1092 = vrot.lane.b32.xlu2 %v1087_v55, %s1589_s29  ;;  %1090 = vrot.lane.b32.xlu1 %v1087_v55, %s1591_s6 }
 0xc35   :  { %1088 = vrot.lane.b32.xlu0 %v1087_v55, %s1590_s30 }
 0xc8e   :  { %v1093_v27 = vpop.permute.xlu2 %1092 }
 0xca6   :  { %v1091_v23 = vpop.permute.xlu1 %1090 }
 0xca7   :  { %v1095_v18 = vmul.f32 %v1091_v23, %v1087_v55  ;;  %v1089_v10 = vpop.permute.xlu0 %1088 }
 0xca8   :  { %v1094_v24 = vmul.f32 %v1089_v10, %v1049_v56 }
 0xcaa   :  { %v1096_v25 = vadd.f32 %v1095_v18, %v1094_v24 }
 0xcac   :  { %1570 = vtanh.f32 %v1096_v25 }
 0xcb2   :  { %v1571_v26 = vpop.eup %1570 }
 0xcb3   :  { %v1098_v28 = vmul.f32 %v1571_v26, %v1093_v27 }
 0xcb5   :  { %v1099_v29 = vpack.c.bf16 %v1098_v28, %v1098_v28 }
 0xcb7   :  { %1109 = vmatmul.bf16.vlgmr.msrb.gmra.mxu2 %v1099_v29 }
 0xd3a   :  { %v1110_v33 = vpop.f32.mrf.mxu2 }
 0xd3b   :  { %v1111_v34 = vadd.f32 %v1110_v33, %v741_v32 }
 0xd3d   :  { %v1412_v36 = vmul.f32 -1.442695, %v1111_v34 }
 0xd3f   :  { %1572 = vpow2.f32 %v1412_v36 }
 0xd42   :  { %v1112_v37 = vpop.f32.mrf.mxu2 }
 0xd45   :  { %v1573_v38 = vpop.eup %1572 }
 0xd46   :  { %v1117_v39 = vadd.f32 1.0, %v1573_v38 }
 0xd48   :  { %1574 = vrcp.f32 %v1117_v39  ;;  %v1129_v43 = vand.u32 2147483648, %v1117_v39  ;;  %v1127_v50 = vand.u32 2147483647, %v1117_v39  ;;  %vm1123_vm15 = vweird.f32 %v1117_v39 }
 0xd49   :  { %1576 = vtanh.f32 %v1111_v34 }
 0xd4a   :  { %v1130_v46 = vor.u32 1.1754944e-38, %v1129_v43  ;;  %vm1128_vm1 = vcmp.eq.f32.partialorder %v1127_v50, 8.507059e+37 }
 0xd4e   :  { %v1575_v40 = vpop.eup %1574 }
 0xd4f   :  { %v1119_v41 = vmul.f32 %v1575_v40, %v1117_v39  ;;  %vm1124_vm14 = vweird.f32 %v1575_v40  ;;  %v1577_v56 = vpop.eup %1576 }
 0xd50   :  { %vm1125_vm0 = vmor %vm1123_vm15, %vm1124_vm14 }
 0xd51   :  { %v1120_v42 = vsub.f32 1.0, %v1119_v41 }
 0xd53   :  { %v1121_v44 = vmul.f32 %v1575_v40, %v1120_v42 }
 0xd55   :  { %v1122_v45 = vadd.f32 %v1575_v40, %v1121_v44 }
 0xd57   :  { %v1126_v47 = vsel %vm1125_vm0, %v1575_v40, %v1122_v45 }
 0xd58   :  { %v1131_v58 = vsel %vm1128_vm1, %v1130_v46, %v1126_v47 }
 0xd59   :  { %v1134_v59 = vsel %vm1738_vm3, %v1577_v56, %v1131_v58 }
 0xd5a   :  { %1139 = vrot.lane.b32.xlu2 %v1134_v59, %s1589_s29  ;;  %1137 = vrot.lane.b32.xlu1 %v1134_v59, %s1591_s6 }
 0xd5b   :  { %1135 = vrot.lane.b32.xlu0 %v1134_v59, %s1590_s30 }
 0xdb4   :  { %v1140_v4 = vpop.permute.xlu2 %1139 }
 0xdcc   :  { %v1138_v61 = vpop.permute.xlu1 %1137 }
 0xdcd   :  { %v1142_v62 = vmul.f32 %v1138_v61, %v1134_v59  ;;  %v1136_v63 = vpop.permute.xlu0 %1135 }
 0xdce   :  { %v1141_v0 = vmul.f32 %v1136_v63, %v1096_v25 }
 0xdd0   :  { %v1143_v2 = vadd.f32 %v1142_v62, %v1141_v0 }
 0xdd2   :  { %1578 = vtanh.f32 %v1143_v2 }
 0xdd8   :  { %v1579_v60 = vpop.eup %1578 }
 0xdd9   :  { %v1145_v5 = vmul.f32 %v1579_v60, %v1140_v4 }
 0xddb   :  { %v1146_v6 = vpack.c.bf16 %v1145_v5, %v1145_v5 }
 0xddd   :  { %1156 = vmatmul.bf16.vlgmr.msra.gmra.mxu3 %v1146_v6 }
 0xe60   :  { %v1157_v9 = vpop.f32.mrf.mxu3 }
 0xe61   :  { %v1158_v1 = vadd.f32 %v1157_v9, %v743_v7 }
 0xe63   :  { %v1413_v11 = vmul.f32 -1.442695, %v1158_v1 }
 0xe65   :  { %1580 = vpow2.f32 %v1413_v11 }
 0xe68   :  { %v1159_v12 = vpop.f32.mrf.mxu3 }
 0xe6b   :  { %v1581_v13 = vpop.eup %1580 }
 0xe6c   :  { %v1164_v57 = vadd.f32 1.0, %v1581_v13 }
 0xe6e   :  { %1582 = vrcp.f32 %v1164_v57  ;;  %v1176_v48 = vand.u32 2147483648, %v1164_v57  ;;  %v1174_v3 = vand.u32 2147483647, %v1164_v57  ;;  %vm1170_vm4 = vweird.f32 %v1164_v57 }
 0xe6f   :  { %1584 = vtanh.f32 %v1158_v1 }
 0xe70   :  { %v1177_v8 = vor.u32 1.1754944e-38, %v1176_v48  ;;  %vm1175_vm6 = vcmp.eq.f32.partialorder %v1174_v3, 8.507059e+37 }
 0xe74   :  { %v1583_v14 = vpop.eup %1582 }
 0xe75   :  { %v1166_v15 = vmul.f32 %v1583_v14, %v1164_v57  ;;  %vm1171_vm2 = vweird.f32 %v1583_v14  ;;  %v1585_v19 = vpop.eup %1584 }
 0xe76   :  { %vm1172_vm5 = vmor %vm1170_vm4, %vm1171_vm2 }
 0xe77   :  { %v1167_v16 = vsub.f32 1.0, %v1166_v15 }
 0xe79   :  { %v1168_v49 = vmul.f32 %v1583_v14, %v1167_v16 }
 0xe7b   :  { %v1169_v17 = vadd.f32 %v1583_v14, %v1168_v49 }
 0xe7d   :  { %v1173_v51 = vsel %vm1172_vm5, %v1583_v14, %v1169_v17 }
 0xe7e   :  { %v1178_v20 = vsel %vm1175_vm6, %v1177_v8, %v1173_v51 }
 0xe7f   :  { %v1181_v21 = vsel %vm1738_vm3, %v1585_v19, %v1178_v20 }
 0xe80   :  { %1186 = vrot.lane.b32.xlu2 %v1181_v21, %s1589_s29  ;;  %1184 = vrot.lane.b32.xlu1 %v1181_v21, %s1591_s6 }
 0xe81   :  { %1182 = vrot.lane.b32.xlu0 %v1181_v21, %s1590_s30 }
 0xeda   :  { %v1187_v18 = vpop.permute.xlu2 %1186 }
 0xef2   :  { %v1185_v52 = vpop.permute.xlu1 %1184 }
 0xef3   :  { %v1189_v53 = vmul.f32 %v1185_v52, %v1181_v21  ;;  %v1183_v22 = vpop.permute.xlu0 %1182 }
 0xef4   :  { %v1188_v54 = vmul.f32 %v1183_v22, %v1143_v2 }
 0xef6   :  { %v1190_v55 = vadd.f32 %v1189_v53, %v1188_v54 }
 0xef8   :  { %1586 = vtanh.f32 %v1190_v55  ;;  %1415 = vst [vmem:[%s2027_s5 + $0x8] sm:$0xff] %v1190_v55 }
 0xefe   :  { %v1587_v23 = vpop.eup %1586 }
 0xeff   :  { %v1192_v35 = vmul.f32 %v1587_v23, %v1187_v18 }
 0xf01   :  { %1414 = vst [vmem:[%s2028_s4 + $0x8] sm:$0xff] %v1192_v35 }

</bundles_post_ra>
